<compile_context>
chip_gen: v6e
topology: v6e:2x2x1
jax: 0.10.0
libtpu: 0.0.40
codegen_flags: <defaults>
</compile_context>

<pallas_src>
import functools
import math

import jax
import jax.numpy as jnp
import numpy as np
from jax import lax
from jax.experimental import pallas as pl
from jax.experimental.pallas import tpu as pltpu


def _round_up(x, m):
    return (x + m - 1) // m * m


def _pick_d_tile(Do, HW, Cin, Cout_p, K3, K, tail, budget_bytes):
    """Largest divisor of Do whose tile fits the VMEM budget (lane-dense)."""
    best = 1
    for td in range(1, Do + 1):
        if Do % td:
            continue
        if (td * HW) % 128 and td != Do:
            continue                      # keep output stores lane-dense
        lt = td * HW
        lx = (td + K - 1) * HW
        need = (Cin * (lx + tail) * 2     # halo'd x slab (bf16)
                + K3 * Cin * lt * 2       # im2col slab (bf16)
                + 3 * Cout_p * lt * 4)    # output block (x2 bufs) + f32 result
        if need <= budget_bytes:
            best = td
    return best


def _conv_styled_kernel(s_ref, x_hbm, w_ref, wsel_ref, bsel_ref, bias_ref,
                        o_ref, x_vmem, col_ref, sem,
                        *, K, Cin, HW, W, Td, Lt, Lx, eps):
    n = pl.program_id(0)
    t = pl.program_id(1)

    # ---- kick off the halo'd x DMA for this (sample, d-tile): Td+K-1 planes.
    start = pl.multiple_of(t * (Td * HW), HW)
    cp = pltpu.make_async_copy(x_hbm.at[n, :, pl.ds(start, Lx)],
                               x_vmem.at[:, pl.ds(0, Lx)], sem)
    cp.start()

    # ---- style modulation, folded into the weights (overlaps the x DMA).
    # per-column scale (1, K^3*Cin): column j = tap*Cin + ci gets style[ci];
    # wsel/bsel are the tap-tiled style Linear, so one small matmul suffices.
    scale = jnp.dot(s_ref[0], wsel_ref[...],
                    preferred_element_type=jnp.float32) + bsel_ref[...]
    wmod = w_ref[...] * scale                               # (Cout_p, K^3*Cin)
    # demodulation from the modulated weights (== reference fan_in sum), f32
    denom = lax.rsqrt(jnp.sum(wmod * wmod, axis=1, keepdims=True) + eps)
    w_bf = (wmod * denom).astype(jnp.bfloat16)              # MXU operand

    # ---- wait for x; zero the tail pad (feeds only cropped outputs).
    cp.wait()
    x_vmem[:, Lx:] = jnp.zeros((Cin, x_vmem.shape[1] - Lx), jnp.bfloat16)

    # ---- build the im2col slab once: 9 unaligned (kh,kw) lane shifts; the kd
    #      component of every tap offset is HW-aligned, so the 27 row groups
    #      are filled from those 9 shifted slabs with aligned copies.
    shift_len = Lt + (K - 1) * HW
    for kh in range(K):
        for kw in range(K):
            base = kh * W + kw
            shifted = x_vmem[:, base:base + shift_len]        # (Cin, shift_len)
            for kd in range(K):
                tap = (kd * K + kh) * K + kw
                col_ref[tap * Cin:(tap + 1) * Cin, :] = (
                    shifted[:, kd * HW:kd * HW + Lt])

    # ---- one fused MXU matmul (contraction K^3*Cin), f32 accumulation,
    #      dense lane-aligned output store.
    acc = jnp.dot(w_bf, col_ref[...], preferred_element_type=jnp.float32)
    o_ref[0] = acc + bias_ref[...]


def conv_styled3d(x, s, weight, bias, w_style, b_style, *, K=3, eps=1e-8,
                  d_tile=None, vmem_budget_bytes=16 * 1024 * 1024):
    """Forward pass of ConvStyled3d (resample=None, stride=1, demodulation)."""
    N, Cin, D, H, W = x.shape
    Cout = weight.shape[0]
    S = s.shape[1]
    HW = H * W
    Do, Ho, Wo = D - K + 1, H - K + 1, W - K + 1
    K3 = K ** 3
    Cout_p = _round_up(Cout, 8)
    tail = _round_up((K - 1) * (W + 1), 128)     # intra-plane tap spill pad

    if d_tile is None:
        d_tile = _pick_d_tile(Do, HW, Cin, Cout_p, K3, K, tail,
                              vmem_budget_bytes)
    if Do % d_tile != 0:
        raise ValueError(f"d_tile={d_tile} must divide Do={Do}")
    Td = d_tile
    Lt = Td * HW                                  # output lane tile
    Lx = (Td + K - 1) * HW                        # halo'd input slab (copied)

    # ---- glue: layout prep (plain JAX, one-time, cheap) ----
    x_flat = x.reshape(N, Cin, D * HW).astype(jnp.bfloat16)   # MXU operand
    s2 = s.reshape(N, 1, S).astype(jnp.float32)
    # weights flattened tap-major: column = ((kd*K+kh)*K+kw)*Cin + ci
    w2 = jnp.transpose(weight, (0, 2, 3, 4, 1)).reshape(Cout, K3 * Cin)
    w2 = jnp.pad(w2.astype(jnp.float32), ((0, Cout_p - Cout), (0, 0)))
    # style Linear, tiled over taps so the per-column scale is one matmul:
    # wsel[s, tap*Cin+ci] = w_style[ci, s],  bsel[0, tap*Cin+ci] = b_style[ci]
    wsel = jnp.tile(w_style.astype(jnp.float32).T, (1, K3))       # (S, K3*Cin)
    bsel = jnp.tile(b_style.astype(jnp.float32).reshape(1, Cin), (1, K3))
    bias2 = jnp.pad(bias.reshape(Cout, 1).astype(jnp.float32),
                    ((0, Cout_p - Cout), (0, 0)))                 # (Cout_p, 1)

    kernel = functools.partial(_conv_styled_kernel, K=K, Cin=Cin, HW=HW, W=W,
                               Td=Td, Lt=Lt, Lx=Lx, eps=eps)

    # VMEM sizing from the actual tile sizes (v7x has 64 MiB, v5e scoped
    # default is only 16 MiB -> set the limit explicitly, capped at 48 MiB).
    const_bytes = (Cout_p * K3 * Cin + (S + 1) * K3 * Cin + Cout_p + S) * 4
    est = (Cin * (Lx + tail) * 2            # halo'd x slab
           + K3 * Cin * Lt * 2              # im2col slab
           + 3 * Cout_p * Lt * 4            # output block (x2) + f32 acc
           + Cin * (Lt + (K - 1) * HW) * 2  # shifted temporary
           + 2 * const_bytes)               # double-buffered constant blocks
    vmem_limit = int(min(48 * 1024 * 1024, max(8 * 1024 * 1024, 4 * est)))

    out_flat = pl.pallas_call(
        kernel,
        out_shape=jax.ShapeDtypeStruct((N, Cout_p, Do * HW), jnp.float32),
        grid_spec=pltpu.PrefetchScalarGridSpec(
            num_scalar_prefetch=0,
            grid=(N, Do // Td),
            in_specs=[
                pl.BlockSpec((1, 1, S), lambda n, t: (n, 0, 0)),        # s
                pl.BlockSpec(memory_space=pl.ANY),                      # x (HBM)
                pl.BlockSpec((Cout_p, K3 * Cin), lambda n, t: (0, 0)),  # weights
                pl.BlockSpec((S, K3 * Cin), lambda n, t: (0, 0)),       # style W (tiled)
                pl.BlockSpec((1, K3 * Cin), lambda n, t: (0, 0)),       # style b (tiled)
                pl.BlockSpec((Cout_p, 1), lambda n, t: (0, 0)),         # conv bias
            ],
            out_specs=pl.BlockSpec((1, Cout_p, Lt), lambda n, t: (n, 0, t)),
            scratch_shapes=[
                pltpu.VMEM((Cin, Lx + tail), jnp.bfloat16),   # halo'd x slab
                pltpu.VMEM((K3 * Cin, Lt), jnp.bfloat16),     # im2col slab
                pltpu.SemaphoreType.DMA(()),                  # DMA completion
            ],
        ),
        compiler_params=pltpu.CompilerParams(
            dimension_semantics=("parallel", "parallel"),
            vmem_limit_bytes=vmem_limit),
    )(s2, x_flat, w2, wsel, bsel, bias2)

    # glue: metadata reshape + single crop (Cout padding, H/W conv margins)
    out = out_flat.reshape(N, Cout_p, Do, H, W)[:, :Cout, :, :Ho, :Wo]
    return out


def reference(x, s, weight, bias, w_style, b_style, eps=1e-8):
    """Pure-JAX (f32) reference mirroring the PyTorch forward."""
    style = s @ w_style.T + b_style                              # (N, Cin)
    w = weight[None] * style[:, None, :, None, None, None]       # (N,Cout,Cin,K,K,K)
    w = w * lax.rsqrt(jnp.sum(w * w, axis=(2, 3, 4, 5), keepdims=True) + eps)

    def one(xn, wn):
        return lax.conv_general_dilated(
            xn[None], wn, window_strides=(1, 1, 1), padding='VALID',
            dimension_numbers=('NCDHW', 'OIDHW', 'NCDHW'))[0]

    out = jax.vmap(one)(x, w)
    return out + bias[None, :, None, None, None]


if __name__ == "__main__":
    N, Cin, Cout, S = 2, 4, 6, 8
    D = H = W = 16
    K = 3

    key = jax.random.PRNGKey(0)
    k1, k2, k3, k4, k5 = jax.random.split(key, 5)

    # kaiming_uniform_(a=0.2, mode='fan_in', nonlinearity='leaky_relu')
    fan_in = Cin * K ** 3
    gain = math.sqrt(2.0 / (1.0 + 0.2 ** 2))
    bound_w = gain * math.sqrt(3.0 / fan_in)
    weight = jax.random.uniform(k1, (Cout, Cin, K, K, K), jnp.float32,
                                -bound_w, bound_w)
    bound_b = 1.0 / math.sqrt(fan_in)
    bias = jax.random.uniform(k2, (Cout,), jnp.float32, -bound_b, bound_b)

    bound_s = gain * math.sqrt(3.0 / S)
    w_style = jax.random.uniform(k3, (Cin, S), jnp.float32, -bound_s, bound_s)
    b_style = jnp.ones((Cin,), jnp.float32)           # Linear bias init: ones

    x = jax.random.normal(k4, (N, Cin, D, H, W), jnp.float32)
    s = jax.random.normal(k5, (N, S), jnp.float32)

    # d_tile=7 -> 2 spatial tiles per sample, exercises the halo'd-DMA tiling.
    out = conv_styled3d(x, s, weight, bias, w_style, b_style, K=K, d_tile=7)
    out = jax.block_until_ready(out)

    ref = reference(x, s, weight, bias, w_style, b_style)
    assert out.shape == (N, Cout, D - K + 1, H - K + 1, W - K + 1), out.shape
    # bf16 MXU operands (x, modulated+demodulated weights) with f32
    # accumulation -> bf16-level tolerance against the pure-f32 reference.
    np.testing.assert_allclose(np.asarray(out), np.asarray(ref),
                               rtol=5e-2, atol=5e-2)
    print("KERNEL_OK")
</pallas_src>

<mosaic_0001>
module attributes {stable_mosaic.version = 11 : i64} {
  func.func @_conv_styled_kernel(%arg0: i32, %arg1: i32, %arg2: memref<1x1x8xf32, #tpu.memory_space<vmem>>, %arg3: memref<2x4x4096xbf16, #tpu.memory_space<any>>, %arg4: memref<8x108xf32, #tpu.memory_space<vmem>>, %arg5: memref<8x108xf32, #tpu.memory_space<vmem>>, %arg6: memref<1x108xf32, #tpu.memory_space<vmem>>, %arg7: memref<8x1xf32, #tpu.memory_space<vmem>>, %arg8: memref<1x8x1792xf32, #tpu.memory_space<vmem>>, %arg9: memref<4x2432xbf16, #tpu.memory_space<vmem>>, %arg10: memref<108x1792xbf16, #tpu.memory_space<vmem>>, %arg11: memref<!tpu.dma_semaphore, #tpu.memory_space<semaphore_mem>>) attributes {dimension_semantics = [#tpu.dimension_semantics<parallel>, #tpu.dimension_semantics<parallel>], iteration_bounds = array<i64: 2, 2>, scalar_prefetch = 0 : i64, scratch_operands = 3 : i64, tpu.core_type = #tpu.core_type<tc>, window_params = [{transform_indices = @transform_0, window_bounds = array<i64: 1, 1, 8>}, {}, {pipeline_mode = #tpu.pipeline_mode<synchronous>, transform_indices = @transform_2, window_bounds = array<i64: 8, 108>}, {pipeline_mode = #tpu.pipeline_mode<synchronous>, transform_indices = @transform_3, window_bounds = array<i64: 8, 108>}, {pipeline_mode = #tpu.pipeline_mode<synchronous>, transform_indices = @transform_4, window_bounds = array<i64: 1, 108>}, {pipeline_mode = #tpu.pipeline_mode<synchronous>, transform_indices = @transform_5, window_bounds = array<i64: 8, 1>}, {transform_indices = @transform_6, window_bounds = array<i64: 1, 8, 1792>}]} {
    %c1792_i32 = arith.constant 1792 : i32
    %0 = arith.muli %arg1, %c1792_i32 : i32
    %1 = tpu.assume_multiple %0, 256 : i32
    %c0_i32 = arith.constant 0 : i32
    %2 = tpu.memref_slice %arg3[%arg0, %c0_i32, %1] : memref<2x4x4096xbf16, #tpu.memory_space<any>> -> memref<1x4x2304xbf16, #tpu.memory_space<any>>
    %3 = tpu.memref_squeeze %2 : memref<1x4x2304xbf16, #tpu.memory_space<any>> -> memref<4x2304xbf16, #tpu.memory_space<any>>
    %c0_i32_0 = arith.constant 0 : i32
    %c0_i32_1 = arith.constant 0 : i32
    %4 = tpu.memref_slice %arg9[%c0_i32_0, %c0_i32_1] : memref<4x2432xbf16, #tpu.memory_space<vmem>> -> memref<4x2304xbf16, #tpu.memory_space<vmem>>
    tpu.enqueue_dma source(%3 : memref<4x2304xbf16, #tpu.memory_space<any>>) target(%4 : memref<4x2304xbf16, #tpu.memory_space<vmem>>) target_semaphore(%arg11 : memref<!tpu.dma_semaphore, #tpu.memory_space<semaphore_mem>>)
    %c0 = arith.constant 0 : index
    %c0_2 = arith.constant 0 : index
    %c0_3 = arith.constant 0 : index
    %5 = vector.load %arg2[%c0, %c0_2, %c0_3] : memref<1x1x8xf32, #tpu.memory_space<vmem>>, vector<1x1x8xf32>
    %6 = vector.shape_cast %5 : vector<1x1x8xf32> to vector<1x8xf32>
    %c0_4 = arith.constant 0 : index
    %c0_5 = arith.constant 0 : index
    %7 = vector.load %arg5[%c0_4, %c0_5] : memref<8x108xf32, #tpu.memory_space<vmem>>, vector<8x108xf32>
    %cst = arith.constant dense<0.000000e+00> : vector<1x108xf32>
    %8 = tpu.matmul %6, %7, %cst {dimension_numbers = #tpu.dot_dimension_numbers<[1], [0], [0], [1], [0, 0, 1, 1], [], []>} : vector<1x8xf32>, vector<8x108xf32>, vector<1x108xf32> -> vector<1x108xf32>
    %c0_6 = arith.constant 0 : index
    %c0_7 = arith.constant 0 : index
    %9 = vector.load %arg6[%c0_6, %c0_7] : memref<1x108xf32, #tpu.memory_space<vmem>>, vector<1x108xf32>
    %10 = arith.addf %8, %9 : vector<1x108xf32>
    %c0_8 = arith.constant 0 : index
    %c0_9 = arith.constant 0 : index
    %11 = vector.load %arg4[%c0_8, %c0_9] : memref<8x108xf32, #tpu.memory_space<vmem>>, vector<8x108xf32>
    %12 = vector.broadcast %10 : vector<1x108xf32> to vector<8x108xf32>
    %13 = arith.mulf %11, %12 : vector<8x108xf32>
    %14 = arith.mulf %13, %13 : vector<8x108xf32>
    %cst_10 = arith.constant dense<0.000000e+00> : vector<8xf32>
    %15 = vector.multi_reduction <add>, %14, %cst_10 [1] : vector<8x108xf32> to vector<8xf32>
    %16 = vector.shape_cast %15 : vector<8xf32> to vector<8x1xf32>
    %cst_11 = arith.constant 9.99999993E-9 : f32
    %17 = vector.broadcast %cst_11 : f32 to vector<8x1xf32>
    %18 = arith.addf %16, %17 : vector<8x1xf32>
    %19 = math.rsqrt %18 : vector<8x1xf32>
    %20 = vector.broadcast %19 : vector<8x1xf32> to vector<8x108xf32>
    %21 = arith.mulf %13, %20 : vector<8x108xf32>
    %22 = arith.truncf %21 : vector<8x108xf32> to vector<8x108xbf16>
    %c0_i32_12 = arith.constant 0 : i32
    %23 = tpu.memref_slice %arg3[%arg0, %c0_i32_12, %1] : memref<2x4x4096xbf16, #tpu.memory_space<any>> -> memref<1x4x2304xbf16, #tpu.memory_space<any>>
    %24 = tpu.memref_squeeze %23 : memref<1x4x2304xbf16, #tpu.memory_space<any>> -> memref<4x2304xbf16, #tpu.memory_space<any>>
    %c0_i32_13 = arith.constant 0 : i32
    %c0_i32_14 = arith.constant 0 : i32
    %25 = tpu.memref_slice %arg9[%c0_i32_13, %c0_i32_14] : memref<4x2432xbf16, #tpu.memory_space<vmem>> -> memref<4x2304xbf16, #tpu.memory_space<vmem>>
    tpu.wait_dma2 semaphore(%arg11 : memref<!tpu.dma_semaphore, #tpu.memory_space<semaphore_mem>>) src(%24 : memref<4x2304xbf16, #tpu.memory_space<any>>) dst(%25 : memref<4x2304xbf16, #tpu.memory_space<vmem>>)
    %cst_15 = arith.constant 0.000000e+00 : bf16
    %26 = vector.broadcast %cst_15 : bf16 to vector<4x128xbf16>
    %c0_16 = arith.constant 0 : index
    %c2304 = arith.constant 2304 : index
    %27 = vector.load %arg9[%c0_16, %c2304] : memref<4x2432xbf16, #tpu.memory_space<vmem>>, vector<4x128xbf16>
    tpu.vector_store %arg9[%c0_16, %c2304], %26 {strides = array<i32>} : memref<4x2432xbf16, #tpu.memory_space<vmem>>, vector<4x128xbf16>,
    %c0_17 = arith.constant 0 : index
    %c0_18 = arith.constant 0 : index
    %28 = vector.load %arg9[%c0_17, %c0_18] : memref<4x2432xbf16, #tpu.memory_space<vmem>>, vector<4x2304xbf16>
    %29 = vector.extract_strided_slice %28 {offsets = [0, 0], sizes = [4, 1792], strides = [1, 1]} : vector<4x2304xbf16> to vector<4x1792xbf16>
    %c0_19 = arith.constant 0 : index
    %c0_20 = arith.constant 0 : index
    %30 = vector.load %arg10[%c0_19, %c0_20] : memref<108x1792xbf16, #tpu.memory_space<vmem>>, vector<4x1792xbf16>
    tpu.vector_store %arg10[%c0_19, %c0_20], %29 {strides = array<i32>} : memref<108x1792xbf16, #tpu.memory_space<vmem>>, vector<4x1792xbf16>,
    %31 = vector.extract_strided_slice %28 {offsets = [0, 256], sizes = [4, 1792], strides = [1, 1]} : vector<4x2304xbf16> to vector<4x1792xbf16>
    %c36 = arith.constant 36 : index
    %c0_21 = arith.constant 0 : index
    %32 = vector.load %arg10[%c36, %c0_21] : memref<108x1792xbf16, #tpu.memory_space<vmem>>, vector<4x1792xbf16>
    tpu.vector_store %arg10[%c36, %c0_21], %31 {strides = array<i32>} : memref<108x1792xbf16, #tpu.memory_space<vmem>>, vector<4x1792xbf16>,
    %33 = vector.extract_strided_slice %28 {offsets = [0, 512], sizes = [4, 1792], strides = [1, 1]} : vector<4x2304xbf16> to vector<4x1792xbf16>
    %c72 = arith.constant 72 : index
    %c0_22 = arith.constant 0 : index
    %34 = vector.load %arg10[%c72, %c0_22] : memref<108x1792xbf16, #tpu.memory_space<vmem>>, vector<4x1792xbf16>
    tpu.vector_store %arg10[%c72, %c0_22], %33 {strides = array<i32>} : memref<108x1792xbf16, #tpu.memory_space<vmem>>, vector<4x1792xbf16>,
    %c0_23 = arith.constant 0 : index
    %c1 = arith.constant 1 : index
    %35 = vector.load %arg9[%c0_23, %c1] : memref<4x2432xbf16, #tpu.memory_space<vmem>>, vector<4x2304xbf16>
    %36 = vector.extract_strided_slice %35 {offsets = [0, 0], sizes = [4, 1792], strides = [1, 1]} : vector<4x2304xbf16> to vector<4x1792xbf16>
    %c4 = arith.constant 4 : index
    %c0_24 = arith.constant 0 : index
    %37 = vector.load %arg10[%c4, %c0_24] : memref<108x1792xbf16, #tpu.memory_space<vmem>>, vector<4x1792xbf16>
    tpu.vector_store %arg10[%c4, %c0_24], %36 {strides = array<i32>} : memref<108x1792xbf16, #tpu.memory_space<vmem>>, vector<4x1792xbf16>,
    %38 = vector.extract_strided_slice %35 {offsets = [0, 256], sizes = [4, 1792], strides = [1, 1]} : vector<4x2304xbf16> to vector<4x1792xbf16>
    %c40 = arith.constant 40 : index
    %c0_25 = arith.constant 0 : index
    %39 = vector.load %arg10[%c40, %c0_25] : memref<108x1792xbf16, #tpu.memory_space<vmem>>, vector<4x1792xbf16>
    tpu.vector_store %arg10[%c40, %c0_25], %38 {strides = array<i32>} : memref<108x1792xbf16, #tpu.memory_space<vmem>>, vector<4x1792xbf16>,
    %40 = vector.extract_strided_slice %35 {offsets = [0, 512], sizes = [4, 1792], strides = [1, 1]} : vector<4x2304xbf16> to vector<4x1792xbf16>
    %c76 = arith.constant 76 : index
    %c0_26 = arith.constant 0 : index
    %41 = vector.load %arg10[%c76, %c0_26] : memref<108x1792xbf16, #tpu.memory_space<vmem>>, vector<4x1792xbf16>
    tpu.vector_store %arg10[%c76, %c0_26], %40 {strides = array<i32>} : memref<108x1792xbf16, #tpu.memory_space<vmem>>, vector<4x1792xbf16>,
    %c0_27 = arith.constant 0 : index
    %c2 = arith.constant 2 : index
    %42 = vector.load %arg9[%c0_27, %c2] : memref<4x2432xbf16, #tpu.memory_space<vmem>>, vector<4x2304xbf16>
    %43 = vector.extract_strided_slice %42 {offsets = [0, 0], sizes = [4, 1792], strides = [1, 1]} : vector<4x2304xbf16> to vector<4x1792xbf16>
    %c8 = arith.constant 8 : index
    %c0_28 = arith.constant 0 : index
    %44 = vector.load %arg10[%c8, %c0_28] : memref<108x1792xbf16, #tpu.memory_space<vmem>>, vector<4x1792xbf16>
    tpu.vector_store %arg10[%c8, %c0_28], %43 {strides = array<i32>} : memref<108x1792xbf16, #tpu.memory_space<vmem>>, vector<4x1792xbf16>,
    %45 = vector.extract_strided_slice %42 {offsets = [0, 256], sizes = [4, 1792], strides = [1, 1]} : vector<4x2304xbf16> to vector<4x1792xbf16>
    %c44 = arith.constant 44 : index
    %c0_29 = arith.constant 0 : index
    %46 = vector.load %arg10[%c44, %c0_29] : memref<108x1792xbf16, #tpu.memory_space<vmem>>, vector<4x1792xbf16>
    tpu.vector_store %arg10[%c44, %c0_29], %45 {strides = array<i32>} : memref<108x1792xbf16, #tpu.memory_space<vmem>>, vector<4x1792xbf16>,
    %47 = vector.extract_strided_slice %42 {offsets = [0, 512], sizes = [4, 1792], strides = [1, 1]} : vector<4x2304xbf16> to vector<4x1792xbf16>
    %c80 = arith.constant 80 : index
    %c0_30 = arith.constant 0 : index
    %48 = vector.load %arg10[%c80, %c0_30] : memref<108x1792xbf16, #tpu.memory_space<vmem>>, vector<4x1792xbf16>
    tpu.vector_store %arg10[%c80, %c0_30], %47 {strides = array<i32>} : memref<108x1792xbf16, #tpu.memory_space<vmem>>, vector<4x1792xbf16>,
    %c0_31 = arith.constant 0 : index
    %c16 = arith.constant 16 : index
    %49 = vector.load %arg9[%c0_31, %c16] : memref<4x2432xbf16, #tpu.memory_space<vmem>>, vector<4x2304xbf16>
    %50 = vector.extract_strided_slice %49 {offsets = [0, 0], sizes = [4, 1792], strides = [1, 1]} : vector<4x2304xbf16> to vector<4x1792xbf16>
    %c12 = arith.constant 12 : index
    %c0_32 = arith.constant 0 : index
    %51 = vector.load %arg10[%c12, %c0_32] : memref<108x1792xbf16, #tpu.memory_space<vmem>>, vector<4x1792xbf16>
    tpu.vector_store %arg10[%c12, %c0_32], %50 {strides = array<i32>} : memref<108x1792xbf16, #tpu.memory_space<vmem>>, vector<4x1792xbf16>,
    %52 = vector.extract_strided_slice %49 {offsets = [0, 256], sizes = [4, 1792], strides = [1, 1]} : vector<4x2304xbf16> to vector<4x1792xbf16>
    %c48 = arith.constant 48 : index
    %c0_33 = arith.constant 0 : index
    %53 = vector.load %arg10[%c48, %c0_33] : memref<108x1792xbf16, #tpu.memory_space<vmem>>, vector<4x1792xbf16>
    tpu.vector_store %arg10[%c48, %c0_33], %52 {strides = array<i32>} : memref<108x1792xbf16, #tpu.memory_space<vmem>>, vector<4x1792xbf16>,
    %54 = vector.extract_strided_slice %49 {offsets = [0, 512], sizes = [4, 1792], strides = [1, 1]} : vector<4x2304xbf16> to vector<4x1792xbf16>
    %c84 = arith.constant 84 : index
    %c0_34 = arith.constant 0 : index
    %55 = vector.load %arg10[%c84, %c0_34] : memref<108x1792xbf16, #tpu.memory_space<vmem>>, vector<4x1792xbf16>
    tpu.vector_store %arg10[%c84, %c0_34], %54 {strides = array<i32>} : memref<108x1792xbf16, #tpu.memory_space<vmem>>, vector<4x1792xbf16>,
    %c0_35 = arith.constant 0 : index
    %c17 = arith.constant 17 : index
    %56 = vector.load %arg9[%c0_35, %c17] : memref<4x2432xbf16, #tpu.memory_space<vmem>>, vector<4x2304xbf16>
    %57 = vector.extract_strided_slice %56 {offsets = [0, 0], sizes = [4, 1792], strides = [1, 1]} : vector<4x2304xbf16> to vector<4x1792xbf16>
    %c16_36 = arith.constant 16 : index
    %c0_37 = arith.constant 0 : index
    %58 = vector.load %arg10[%c16_36, %c0_37] : memref<108x1792xbf16, #tpu.memory_space<vmem>>, vector<4x1792xbf16>
    tpu.vector_store %arg10[%c16_36, %c0_37], %57 {strides = array<i32>} : memref<108x1792xbf16, #tpu.memory_space<vmem>>, vector<4x1792xbf16>,
    %59 = vector.extract_strided_slice %56 {offsets = [0, 256], sizes = [4, 1792], strides = [1, 1]} : vector<4x2304xbf16> to vector<4x1792xbf16>
    %c52 = arith.constant 52 : index
    %c0_38 = arith.constant 0 : index
    %60 = vector.load %arg10[%c52, %c0_38] : memref<108x1792xbf16, #tpu.memory_space<vmem>>, vector<4x1792xbf16>
    tpu.vector_store %arg10[%c52, %c0_38], %59 {strides = array<i32>} : memref<108x1792xbf16, #tpu.memory_space<vmem>>, vector<4x1792xbf16>,
    %61 = vector.extract_strided_slice %56 {offsets = [0, 512], sizes = [4, 1792], strides = [1, 1]} : vector<4x2304xbf16> to vector<4x1792xbf16>
    %c88 = arith.constant 88 : index
    %c0_39 = arith.constant 0 : index
    %62 = vector.load %arg10[%c88, %c0_39] : memref<108x1792xbf16, #tpu.memory_space<vmem>>, vector<4x1792xbf16>
    tpu.vector_store %arg10[%c88, %c0_39], %61 {strides = array<i32>} : memref<108x1792xbf16, #tpu.memory_space<vmem>>, vector<4x1792xbf16>,
    %c0_40 = arith.constant 0 : index
    %c18 = arith.constant 18 : index
    %63 = vector.load %arg9[%c0_40, %c18] : memref<4x2432xbf16, #tpu.memory_space<vmem>>, vector<4x2304xbf16>
    %64 = vector.extract_strided_slice %63 {offsets = [0, 0], sizes = [4, 1792], strides = [1, 1]} : vector<4x2304xbf16> to vector<4x1792xbf16>
    %c20 = arith.constant 20 : index
    %c0_41 = arith.constant 0 : index
    %65 = vector.load %arg10[%c20, %c0_41] : memref<108x1792xbf16, #tpu.memory_space<vmem>>, vector<4x1792xbf16>
    tpu.vector_store %arg10[%c20, %c0_41], %64 {strides = array<i32>} : memref<108x1792xbf16, #tpu.memory_space<vmem>>, vector<4x1792xbf16>,
    %66 = vector.extract_strided_slice %63 {offsets = [0, 256], sizes = [4, 1792], strides = [1, 1]} : vector<4x2304xbf16> to vector<4x1792xbf16>
    %c56 = arith.constant 56 : index
    %c0_42 = arith.constant 0 : index
    %67 = vector.load %arg10[%c56, %c0_42] : memref<108x1792xbf16, #tpu.memory_space<vmem>>, vector<4x1792xbf16>
    tpu.vector_store %arg10[%c56, %c0_42], %66 {strides = array<i32>} : memref<108x1792xbf16, #tpu.memory_space<vmem>>, vector<4x1792xbf16>,
    %68 = vector.extract_strided_slice %63 {offsets = [0, 512], sizes = [4, 1792], strides = [1, 1]} : vector<4x2304xbf16> to vector<4x1792xbf16>
    %c92 = arith.constant 92 : index
    %c0_43 = arith.constant 0 : index
    %69 = vector.load %arg10[%c92, %c0_43] : memref<108x1792xbf16, #tpu.memory_space<vmem>>, vector<4x1792xbf16>
    tpu.vector_store %arg10[%c92, %c0_43], %68 {strides = array<i32>} : memref<108x1792xbf16, #tpu.memory_space<vmem>>, vector<4x1792xbf16>,
    %c0_44 = arith.constant 0 : index
    %c32 = arith.constant 32 : index
    %70 = vector.load %arg9[%c0_44, %c32] : memref<4x2432xbf16, #tpu.memory_space<vmem>>, vector<4x2304xbf16>
    %71 = vector.extract_strided_slice %70 {offsets = [0, 0], sizes = [4, 1792], strides = [1, 1]} : vector<4x2304xbf16> to vector<4x1792xbf16>
    %c24 = arith.constant 24 : index
    %c0_45 = arith.constant 0 : index
    %72 = vector.load %arg10[%c24, %c0_45] : memref<108x1792xbf16, #tpu.memory_space<vmem>>, vector<4x1792xbf16>
    tpu.vector_store %arg10[%c24, %c0_45], %71 {strides = array<i32>} : memref<108x1792xbf16, #tpu.memory_space<vmem>>, vector<4x1792xbf16>,
    %73 = vector.extract_strided_slice %70 {offsets = [0, 256], sizes = [4, 1792], strides = [1, 1]} : vector<4x2304xbf16> to vector<4x1792xbf16>
    %c60 = arith.constant 60 : index
    %c0_46 = arith.constant 0 : index
    %74 = vector.load %arg10[%c60, %c0_46] : memref<108x1792xbf16, #tpu.memory_space<vmem>>, vector<4x1792xbf16>
    tpu.vector_store %arg10[%c60, %c0_46], %73 {strides = array<i32>} : memref<108x1792xbf16, #tpu.memory_space<vmem>>, vector<4x1792xbf16>,
    %75 = vector.extract_strided_slice %70 {offsets = [0, 512], sizes = [4, 1792], strides = [1, 1]} : vector<4x2304xbf16> to vector<4x1792xbf16>
    %c96 = arith.constant 96 : index
    %c0_47 = arith.constant 0 : index
    %76 = vector.load %arg10[%c96, %c0_47] : memref<108x1792xbf16, #tpu.memory_space<vmem>>, vector<4x1792xbf16>
    tpu.vector_store %arg10[%c96, %c0_47], %75 {strides = array<i32>} : memref<108x1792xbf16, #tpu.memory_space<vmem>>, vector<4x1792xbf16>,
    %c0_48 = arith.constant 0 : index
    %c33 = arith.constant 33 : index
    %77 = vector.load %arg9[%c0_48, %c33] : memref<4x2432xbf16, #tpu.memory_space<vmem>>, vector<4x2304xbf16>
    %78 = vector.extract_strided_slice %77 {offsets = [0, 0], sizes = [4, 1792], strides = [1, 1]} : vector<4x2304xbf16> to vector<4x1792xbf16>
    %c28 = arith.constant 28 : index
    %c0_49 = arith.constant 0 : index
    %79 = vector.load %arg10[%c28, %c0_49] : memref<108x1792xbf16, #tpu.memory_space<vmem>>, vector<4x1792xbf16>
    tpu.vector_store %arg10[%c28, %c0_49], %78 {strides = array<i32>} : memref<108x1792xbf16, #tpu.memory_space<vmem>>, vector<4x1792xbf16>,
    %80 = vector.extract_strided_slice %77 {offsets = [0, 256], sizes = [4, 1792], strides = [1, 1]} : vector<4x2304xbf16> to vector<4x1792xbf16>
    %c64 = arith.constant 64 : index
    %c0_50 = arith.constant 0 : index
    %81 = vector.load %arg10[%c64, %c0_50] : memref<108x1792xbf16, #tpu.memory_space<vmem>>, vector<4x1792xbf16>
    tpu.vector_store %arg10[%c64, %c0_50], %80 {strides = array<i32>} : memref<108x1792xbf16, #tpu.memory_space<vmem>>, vector<4x1792xbf16>,
    %82 = vector.extract_strided_slice %77 {offsets = [0, 512], sizes = [4, 1792], strides = [1, 1]} : vector<4x2304xbf16> to vector<4x1792xbf16>
    %c100 = arith.constant 100 : index
    %c0_51 = arith.constant 0 : index
    %83 = vector.load %arg10[%c100, %c0_51] : memref<108x1792xbf16, #tpu.memory_space<vmem>>, vector<4x1792xbf16>
    tpu.vector_store %arg10[%c100, %c0_51], %82 {strides = array<i32>} : memref<108x1792xbf16, #tpu.memory_space<vmem>>, vector<4x1792xbf16>,
    %c0_52 = arith.constant 0 : index
    %c34 = arith.constant 34 : index
    %84 = vector.load %arg9[%c0_52, %c34] : memref<4x2432xbf16, #tpu.memory_space<vmem>>, vector<4x2304xbf16>
    %85 = vector.extract_strided_slice %84 {offsets = [0, 0], sizes = [4, 1792], strides = [1, 1]} : vector<4x2304xbf16> to vector<4x1792xbf16>
    %c32_53 = arith.constant 32 : index
    %c0_54 = arith.constant 0 : index
    %86 = vector.load %arg10[%c32_53, %c0_54] : memref<108x1792xbf16, #tpu.memory_space<vmem>>, vector<4x1792xbf16>
    tpu.vector_store %arg10[%c32_53, %c0_54], %85 {strides = array<i32>} : memref<108x1792xbf16, #tpu.memory_space<vmem>>, vector<4x1792xbf16>,
    %87 = vector.extract_strided_slice %84 {offsets = [0, 256], sizes = [4, 1792], strides = [1, 1]} : vector<4x2304xbf16> to vector<4x1792xbf16>
    %c68 = arith.constant 68 : index
    %c0_55 = arith.constant 0 : index
    %88 = vector.load %arg10[%c68, %c0_55] : memref<108x1792xbf16, #tpu.memory_space<vmem>>, vector<4x1792xbf16>
    tpu.vector_store %arg10[%c68, %c0_55], %87 {strides = array<i32>} : memref<108x1792xbf16, #tpu.memory_space<vmem>>, vector<4x1792xbf16>,
    %89 = vector.extract_strided_slice %84 {offsets = [0, 512], sizes = [4, 1792], strides = [1, 1]} : vector<4x2304xbf16> to vector<4x1792xbf16>
    %c104 = arith.constant 104 : index
    %c0_56 = arith.constant 0 : index
    %90 = vector.load %arg10[%c104, %c0_56] : memref<108x1792xbf16, #tpu.memory_space<vmem>>, vector<4x1792xbf16>
    tpu.vector_store %arg10[%c104, %c0_56], %89 {strides = array<i32>} : memref<108x1792xbf16, #tpu.memory_space<vmem>>, vector<4x1792xbf16>,
    %c0_57 = arith.constant 0 : index
    %c0_58 = arith.constant 0 : index
    %91 = vector.load %arg10[%c0_57, %c0_58] : memref<108x1792xbf16, #tpu.memory_space<vmem>>, vector<108x1792xbf16>
    %cst_59 = arith.constant dense<0.000000e+00> : vector<8x1792xf32>
    %92 = tpu.matmul %22, %91, %cst_59 {dimension_numbers = #tpu.dot_dimension_numbers<[1], [0], [0], [1], [0, 0, 1, 1], [], []>} : vector<8x108xbf16>, vector<108x1792xbf16>, vector<8x1792xf32> -> vector<8x1792xf32>
    %c0_60 = arith.constant 0 : index
    %c0_61 = arith.constant 0 : index
    %93 = vector.load %arg7[%c0_60, %c0_61] : memref<8x1xf32, #tpu.memory_space<vmem>>, vector<8x1xf32>
    %94 = vector.broadcast %93 : vector<8x1xf32> to vector<8x1792xf32>
    %95 = arith.addf %92, %94 : vector<8x1792xf32>
    %c0_62 = arith.constant 0 : index
    %c0_63 = arith.constant 0 : index
    %c0_64 = arith.constant 0 : index
    %96 = vector.load %arg8[%c0_62, %c0_63, %c0_64] : memref<1x8x1792xf32, #tpu.memory_space<vmem>>, vector<1x8x1792xf32>
    %97 = vector.shape_cast %96 : vector<1x8x1792xf32> to vector<8x1792xf32>
    %98 = vector.shape_cast %95 : vector<8x1792xf32> to vector<1x8x1792xf32>
    tpu.vector_store %arg8[%c0_62, %c0_63, %c0_64], %98 {strides = array<i32>} : memref<1x8x1792xf32, #tpu.memory_space<vmem>>, vector<1x8x1792xf32>,
    return
  }
  func.func @transform_0(%arg0: i32, %arg1: i32) -> (i32, i32, i32) {
    %c0_i32 = arith.constant 0 : i32
    %c0_i32_0 = arith.constant 0 : i32
    %c0_i32_1 = arith.constant 0 : i32
    return %arg0, %c0_i32, %c0_i32_0 : i32, i32, i32
  }
  func.func @transform_2(%arg0: i32, %arg1: i32) -> (i32, i32) {
    %c0_i32 = arith.constant 0 : i32
    %c0_i32_0 = arith.constant 0 : i32
    %c0_i32_1 = arith.constant 0 : i32
    return %c0_i32, %c0_i32_0 : i32, i32
  }
  func.func @transform_3(%arg0: i32, %arg1: i32) -> (i32, i32) {
    %c0_i32 = arith.constant 0 : i32
    %c0_i32_0 = arith.constant 0 : i32
    %c0_i32_1 = arith.constant 0 : i32
    return %c0_i32, %c0_i32_0 : i32, i32
  }
  func.func @transform_4(%arg0: i32, %arg1: i32) -> (i32, i32) {
    %c0_i32 = arith.constant 0 : i32
    %c0_i32_0 = arith.constant 0 : i32
    %c0_i32_1 = arith.constant 0 : i32
    return %c0_i32, %c0_i32_0 : i32, i32
  }
  func.func @transform_5(%arg0: i32, %arg1: i32) -> (i32, i32) {
    %c0_i32 = arith.constant 0 : i32
    %c0_i32_0 = arith.constant 0 : i32
    %c0_i32_1 = arith.constant 0 : i32
    return %c0_i32, %c0_i32_0 : i32, i32
  }
  func.func @transform_6(%arg0: i32, %arg1: i32) -> (i32, i32, i32) {
    %c0_i32 = arith.constant 0 : i32
    %c0_i32_0 = arith.constant 0 : i32
    return %arg0, %c0_i32, %arg1 : i32, i32, i32
  }
}

</mosaic_0001>

<bundles_post_ra>
// kernel: tpu_custom_call.1
= control target key start
LH: loop header
LB: loop body
LE: loop exit
PB: predicated region body
PF: predicated region fallthrough
CT: control target
= control target key end

     0   :  { %s5172_s0 = inlined_call_operand.vmem [shape: f32[2,1,8], index: 0, kind: input, shape index: {}]   ;;  %s5173_s1 = inlined_call_operand.hbm [shape: bf16[2,4,4096], index: 1, kind: input, shape index: {}]   ;;  %s5174_s2 = inlined_call_operand.vmem [shape: f32[8,108], index: 2, kind: input, shape index: {}]   ;;  %s5175_s3 = inlined_call_operand.hbm [shape: f32[8,108], index: 3, kind: input, shape index: {}]   ;;  %s5176_s4 = inlined_call_operand.vmem [shape: f32[1,108], index: 4, kind: input, shape index: {}]   ;;  %s5177_s5 = inlined_call_operand.vmem [shape: f32[8,1], index: 5, kind: input, shape index: {}]   ;;  %s5178_s6 = inlined_call_operand.hbm [shape: f32[2,8,3584], index: 6, kind: output, shape index: {}]  }
   0x1   :  { %5182 = sst [smem:[#allocation18_spill]] %s5172_s0 }
   0x2   :  { %5183 = sst [smem:[#allocation19_spill]] %s5174_s2 }
   0x3   :  { %5184 = sst [smem:[#allocation20_spill]] %s5175_s3 }
   0x4   :  { %5185 = sst [smem:[#allocation21_spill]] %s5176_s4 }
   0x5   :  { %11 = vsyncpa [#allocation6], 0 }
   0x6   :  { %12 = vsyncpa [#allocation7], 0 }
   0x7   :  { %14 = vsyncpa [#allocation7 + $0x1], 0  ;;  %s3981_s21 = smov 0   ;;  %s3983_s22 = smov 0  }
   0x8   :  { %s3985_s23 = smov 0   ;;  %s3987_s24 = smov 0  }
   0x9   :  { %s3989_s25 = smov 0   ;;  %s3991_s26 = smov 0  }
   0xa   :  { %s3993_s27 = smov 0   ;;  %s3995_s28 = smov 0  }
   0xb LB: > { %s3365_s29 = sadd.s32 4294967295, %s3929_s28   ;;  %s3366_s30 = sadd.s32 4294967294, %s3929_s28   ;;  %s3929_s28 = sphi %s3995_s28, %s20_s28   ;;  %s3925_s27 = sphi %s3993_s27, %s5206_s27   ;;  %s3921_s26 = sphi %s3991_s26, %s5205_s26   ;;  %s3917_s25 = sphi %s3989_s25, %s5204_s25   ;;  %s3913_s24 = sphi %s3987_s24, %s5203_s24   ;;  %s3909_s23 = sphi %s3985_s23, %s5202_s23   ;;  %s3905_s22 = sphi %s3983_s22, %s5201_s22   ;;  %s3901_s21 = sphi %s3981_s21, %s5200_s21  }
   0xc   : > { %s29_s7 = sadd.s32 1, %s3921_s26  ;;  %s32_s8 = sadd.s32 1, %s3925_s27 }
   0xd   : > { %p30_p0 = scmp.ge.s32.totalorder %s29_s7, 2  ;;  %s151_s9 = sadd.s32 1, %s3909_s23 }
   0xe   : > { %p161_p1 = scmp.ne.s32.totalorder %s3909_s23, %s3905_s22  ;;  %p162_p2 = scmp.eq.s32.totalorder %s3365_s29, 3 }
   0xf   : > { %s5208_s7 = smov (%p30_p0, %s29_s7), 0  ;;  %s5210_s8 = smov (!%p30_p0, %s32_s8), %s3925_s27 }
  0x10   : > { %5186 = sst [smem:[#allocation16_spill]] %s5208_s7  ;;  %s147_s10 = ssub.s32 %s3921_s26, %s5208_s7 }
  0x11   : > { %p4033_p3 = por %p162_p2, %p161_p1  ;;  %p34_p4 = scmp.ge.s32.totalorder %s5210_s8, 2 }
  0x12   : > { %p167_p5 = scmp.ne.s32.totalorder %s3905_s22, %s3901_s21  ;;  %p168_p6 = scmp.eq.s32.totalorder %s3366_s30, 3 }
  0x13   : > { %p3367_p7 = scmp.ge.s32.totalorder %s3929_s28, 1  ;;  %s5212_s8 = smov (%p34_p4, %s5210_s8), 0 }
  0x14   : > { %5188 = sst [smem:[#allocation17_spill]] %s5212_s8  ;;  %p4042_p8 = por %p168_p6, %p167_p5 }
  0x15   : > { %p175_p9 = scmp.lt.s32.totalorder %s3929_s28, 5  ;;  %s146_s13 = ssub.s32 %s3925_s27, %s5212_s8 }
  0x16   : > { %s5189_s12 = scalar_select %p4042_p8, 1, 0 }
  0x17   : > { %s148_s14 = sor.u32 %s147_s10, %s146_s13  ;;  %p4049_p10 = pnand %p3367_p7, %p175_p9 }
  0x18   : > { %p149_p11 = scmp.eq.s32.totalorder %s148_s14, 0  ;;  %p4053_p12 = scmp.eq.s32.totalorder %s3365_s29, 0 }
  0x19   : > { %p3527_p13 = pneg %p4049_p10  ;;  %s3931_s18 = smov [#allocation5]  }
  0x1a   : > { %s4060_s17 = scalar_select %p149_p11, %s3909_s23, %s151_s9  }
  0x1b   : > { %s191_s19 = sshll.u32 %s3931_s18, 4  ;;  %p3528_p0 = pnand %p4053_p12, %p3527_p13  ;;  %s192_s19 = int_to_ptr.vmem [resolvable:$true] %s191_s19 }
  0x1c   : > { %s3794_s20 = scalar_lea.vmem %s192_s19, 128  ;;  %p3802_p6 = scmp.lt.s32.totalorder %s192_s19, %s192_s19 }
  0x1d   : > { %p3785_p1 = pneg %p3528_p0  ;;  %p3795_p2 = scmp.ne.s32.totalorder %s192_s19, %s3794_s20 }
  0x1e   : > { %p3803_p7 = scmp.lt.s32.totalorder %s3794_s20, %s3794_s20 }
  0x1f   : > { %p3797_p4 = pnand %p3795_p2, %p3785_p1 }
  0x20   : > { %p3804_p9 = por %p3803_p7, %p3802_p6 }
  0x21   : > { %p3798_p5 = pneg %p3797_p4 }
  0x23   : > { %p3805_p8 = pnand %p3804_p9, %p3798_p5 }
  0x25   : > { %3808 = shalt.err (!%p3805_p8)
}
  0x26   : > { %s5192_s3 = sld [smem:[#allocation20_spill]] }
  0x28   : > { %216 = sbr.rel (%p4049_p10) target bundleno = 994 (0x3e2), region = 40 }
  0x2c   : > { %3530 = dma.hbm_to_vmem [thread:$0]  (!%p3528_p0), %s5192_s3, 128, %s192_s19, [#allocation6]  }
  0x2d   : > { %3890 = dma.done.wait (%p4053_p12), [#allocation6], 128  }
  0x2e   : > { %3892 = vsyncadd (%p4053_p12), [#allocation6], 4294967168  ;;  %p242_p11 = scmp.lt.s32.totalorder %s3917_s25, 1  ;;  %v3932_v0 = vmov 0.0   ;;  %vm3933_vm0 = vmmov 0   ;;  %s5193_s0 = sld [smem:[#allocation18_spill]]  ;;  %v343_v3 = vlaneseq }
  0x2f   : > { %3514 = vmatprep.subr.mxu0 %v3932_v0  ;;  %3516 = vmatprep.mubr.msk.f32.mxu0 %vm3933_vm0, %v3932_v0  ;;  %vm268_vm1 = vcmask 64512   ;;  %v266_v1 = vld [vmem:[#allocation5] sm:$0xff]  ;;  %s5194_s4 = sld [smem:[#allocation21_spill]]  ;;  %vm349_vm2 = vcmask 883712   ;;  %s247_s20 = smul.u32 1792, %s3913_s24 }
  0x30   : > { %s243_s9 = scalar_select %p242_p11, %s3917_s25, 1  ;;  %3515 = vmatpush3.msra.mxu0 %v266_v1  ;;  %v344_v4 = vshrl.u32 %v343_v3, 7 }
  0x31   : > { %s5195_s2 = sld [smem:[#allocation19_spill]]  ;;  %s248_s29 = sshra.s32 %s247_s20, 7 }
  0x32   : > { %v345_v6 = vsub.s32 0, %v344_v4  ;;  %s3372_s30 = sshll.u32 %s3917_s25, 5  ;;  %s3934_s19 = smov [#allocation2]  }
  0x33   : > { %s251_s10 = sadd.s32 %s3372_s30, %s248_s29  ;;  %s3811_s8 = scalar_lea.hbm %s5173_s1, 2048 }
  0x34   : > { %s244_s14 = scalar_lea.vmem %s5193_s0, %s243_s9  ;;  %s239_s9 = sand.u32 1, %s3905_s22  }
  0x35   : > { %v265_v2 = vld [vmem:[%s244_s14] sm:$0x1]  ;;  %s3519_s13 = smul.u32 112, %s239_s9  ;;  %s3373_s14 = sshll.u32 %s251_s10, 5 }
  0x36   : > { %3517 = vmatmul.mubr.msk.f32.vlgmr.msra.gmra.mxu0 %vm268_vm1, %v265_v2  ;;  %v267_v5 = vld [vmem:[%s5194_s4] sm:$0x1]  ;;  %s253_s18 = scalar_lea.hbm %s5173_s1, %s3373_s14  ;;  %s261_s0 = sshll.u32 %s3934_s19, 4  ;;  %s262_s0 = int_to_ptr.vmem [resolvable:$true] %s261_s0 }
  0x37   : > { %v342_v10 = vld [vmem:[%s5195_s2] sm:$0xff]  ;;  %s3809_s2 = scalar_lea.hbm %s253_s18, 576  ;;  %p3812_p10 = scmp.lt.s32.totalorder %s253_s18, %s5173_s1 }
  0x38   : > { %p3810_p8 = scmp.ne.s32.totalorder %s253_s18, %s3809_s2  ;;  %p3813_p12 = scmp.lt.s32.totalorder %s3811_s8, %s3809_s2 }
  0x3a   : > { %p3814_p13 = por %p3813_p12, %p3812_p10 }
  0x3c   : > { %p3815_p0 = pnand %p3814_p13, %p3810_p8 }
  0xf6   : > { %v338_v7 = vpop.f32.mrf.mxu0 }
  0xf7   : > { %v339_v8 = vadd.f32 %v338_v7, %v267_v5 }
  0xf8   : > { %v3518_v9 = vpop.f32.mrf.mxu0 }
  0xf9   : > { %v346_v11 = vrot.slane %v339_v8, %v345_v6 }
  0xfb   : > { %v347_v12 = vmul.f32 %v346_v11, %v342_v10 }
  0xfd   : > { %v348_v13 = vmul.f32 %v347_v12, %v347_v12 }
  0xff   : > { %v350_v14 = vsel %vm349_vm2, %v348_v13, 0.0 }
 0x100   : > { %351 = vadd.xlane.f32.xlu0 %v350_v14 }
 0x101   : > { %3818 = shalt.err (!%p3815_p0)  }
 0x102   : > { %s3819_s29 = scalar_lea.vmem %s262_s0, 576  ;;  %s3823_s30 = scalar_lea.vmem %s262_s0, 608 }
 0x103   : > { %p3820_p1 = scmp.ne.s32.totalorder %s262_s0, %s3819_s29  ;;  %p3824_p2 = scmp.lt.s32.totalorder %s262_s0, %s262_s0 }
 0x104   : > { %p3825_p4 = scmp.lt.s32.totalorder %s3823_s30, %s3819_s29 }
 0x106   : > { %p3826_p5 = por %p3825_p4, %p3824_p2 }
 0x108   : > { %p3827_p6 = pnand %p3826_p5, %p3820_p1 }
 0x10a   : > { %3830 = shalt.err (!%p3827_p6)  }
 0x10b   : > { %264 = dma.hbm_to_vmem [thread:$0]  %s253_s18, 576, %s262_s0, [#allocation4] }
 0x10c   : > { %s4101_s2 = scalar_lea.vmem [#allocation8], %s3519_s13 }
 0x189   : > { %v352_v15 = vpop.xlane.xlu0 %351 }
 0x18a   : > { %v353_v16 = vadd.f32 1e-08, %v352_v15 }
 0x18c   : > { %3616 = vrsqrt.f32 %v353_v16 }
 0x199   : > { %v3617_v17 = vpop.eup %3616 }
 0x19a   : > { %v355_v18 = vmul.f32 %v3617_v17, %v347_v12 }
 0x19c   : > { %v4099_v19 = vpack.c.bf16 %v355_v18, %v355_v18 }
 0x19d   : > { %3893 = dma.done.wait [#allocation4], 576 }
 0x19e   : > { %3894 = vsyncadd [#allocation4], 4294966720  ;;  %v3935_v20 = vmov 1983009808   ;;  %v1872_v24 = vld [vmem:[#allocation2 + $0x8] sm:$0xff]  ;;  %v2100_v25 = vld [vmem:[#allocation2] sm:$0xff] }
 0x19f   : > { %v507_v21 = vunpack.c.l.s4 %v3935_v20  ;;  %v1895_v27 = vcombine.low %v1872_v24, %v1872_v24  ;;  %3390 = vst.sshfl [vmem:[#allocation3 + $0x1f8] sm:$0xf pattern:$0x76325410] %v1872_v24  ;;  %s3936_s0 = smov 95   ;;  %s3937_s3 = smov 96   ;;  %v4109_v29 = vcombine.high %v1872_v24, %v1872_v24  ;;  %v1994_v31 = vcombine.high %v2100_v25, %v2100_v25 }
 0x1a0   : > { %3377 = vst.sshfl [vmem:[#allocation3 + $0x10] sm:$0xf pattern:$0x76325410] %v1872_v24  ;;  %s3938_s4 = smov 94   ;;  %s3939_s7 = smov 126   ;;  %v1422_v35 = vcombine.low %v2100_v25, %v2100_v25 }
 0x1a1   : > { %v508_v22 = vunpack.c.0.s8 %v507_v21  ;;  %3384 = vst.sshfl [vmem:[#allocation3 + $0xf0] sm:$0xf0 pattern:$0x76325410] %v1872_v24  ;;  %s3940_s8 = smov 112   ;;  %s3941_s10 = smov 111  }
 0x1a2   : > { %3382 = vst.sshfl [vmem:[#allocation3 + $0xe0] sm:$0xf0 pattern:$0x76325410] %v2100_v25  ;;  %s3942_s13 = smov 110   ;;  %s3943_s14 = smov 127  }
 0x1a3   : > { %v4103_v23 = vsub.s32 %v508_v22, %v344_v4  ;;  %3375 = vst.sshfl [vmem:[#allocation3] sm:$0xf pattern:$0x76325410] %v2100_v25  ;;  %v3944_v34 = vmov 0   ;;  %v1644_v37 = vld [vmem:[#allocation2 + $0x10] sm:$0xff] }
 0x1a4   : > { %361 = vst [vmem:[#allocation2 + $0x24] sm:$0x3] %v3944_v34  ;;  %2987 = vmatprep.mubr.bf16.mxu1 %v3944_v34  ;;  %3028 = vmatprep.mubr.bf16.mxu0 %v3944_v34  ;;  %3383 = vst.sshfl [vmem:[#allocation3 + $0xe8] sm:$0xf0 pattern:$0x76325410] %v1895_v27  ;;  %v1681_v38 = vcombine.high %v1644_v37, %v1644_v37  ;;  %v1910_v41 = vcombine.low %v1644_v37, %v1644_v37 }
 0x1a5   : > { %v1909_v26 = vrot.slane %v1872_v24, %v4103_v23  ;;  %v1902_v28 = vrot.slane %v1895_v27, %v4103_v23  ;;  %v4115_v30 = vrot.slane %v4109_v29, %v4103_v23  ;;  %v2116_v32 = vrot.slane %v2100_v25, %v4103_v23  ;;  %3618 = vset.pattern.permute.xlu0 %v3944_v34  ;;  %v4168_v42 = vld [vmem:[#allocation2 + $0x10] sm:$0xff]  ;;  %v1645_v47 = vld [vmem:[#allocation2 + $0x18] sm:$0xff]  ;;  %s3264_s18 = smul.u32 14, %s3913_s24  ;;  %s3273_s30 = sshll.u32 %s4101_s2, 4  ;;  %s5118_s30 = int_to_ptr.vmem [resolvable:$true] %s3273_s30 }
 0x1a6   : > { %v2001_v33 = vrot.slane %v1994_v31, %v4103_v23  ;;  %v1429_v36 = vrot.slane %v1422_v35, %v4103_v23  ;;  %3376 = vst.sshfl [vmem:[#allocation3 + $0x8] sm:$0xf pattern:$0x76325410] %v1994_v31  ;;  %v1688_v39 = vrot.slane %v1644_v37, %v4103_v23  ;;  %v4166_v40 = vrot.slane %v1681_v38, %v4103_v23  ;;  %v4260_v6 = vld [vmem:[#allocation2 + $0x18] sm:$0xff]  ;;  %s3520_s19 = smul.u32 28, %s3917_s25 }
 0x1a7   : > { %1946 = vrot.lane.b32.xlu1 %v1909_v26, %s3936_s0  ;;  %1715 = vrot.lane.b32.xlu0 %v1909_v26, %s3937_s3  ;;  %v1917_v43 = vrot.slane %v1910_v41, %v4103_v23  ;;  %3392 = vst.sshfl [vmem:[#allocation3 + $0x208] sm:$0xf pattern:$0x76325410] %v4168_v42  ;;  %v445_v44 = vcombine.low %v4168_v42, %v4168_v42  ;;  %vm589_vm3 = vcmask 1043456   ;;  %vm1965_vm4 = vcmask 777216  }
 0x1a8   : > { %3379 = vst.sshfl [vmem:[#allocation3 + $0x20] sm:$0xf pattern:$0x76325410] %v4168_v42  ;;  %v1696_v52 = vcombine.high %v1645_v47, %v1645_v47  ;;  %vm2194_vm5 = vcmask 769024   ;;  %v4237_v59 = vrot.slane %v1645_v47, %v4103_v23  ;;  %v1925_v61 = vcombine.low %v1645_v47, %v1645_v47  ;;  %s3269_s20 = sadd.s32 %s3520_s19, %s3264_s18 }
 0x1a9   : > { %3386 = vst.sshfl [vmem:[#allocation3 + $0x100] sm:$0xf0 pattern:$0x76325410] %v4168_v42  ;;  %vm1736_vm6 = vcmask 785408   ;;  %vm820_vm7 = vcmask 1031168   ;;  %v453_v10 = vcombine.low %v4260_v6, %v4260_v6 }
 0x1aa   : > { %3385 = vst.sshfl [vmem:[#allocation3 + $0xf8] sm:$0xf0 pattern:$0x76325410] %v445_v44  ;;  %v4240_v60 = vrot.slane %v1696_v52, %v4103_v23  ;;  %v4267_v7 = vrot.slane %v1925_v61, %v4103_v23  ;;  %vm1049_vm8 = vcmask 916480   ;;  %vm1278_vm9 = vcmask 908288  }
 0x1ab   : > { %1944 = vrot.lane.b32.xlu1 %v1902_v28, %s3936_s0  ;;  %2173 = vrot.lane.b32.xlu0 %v1909_v26, %s3938_s4  ;;  %3391 = vst.sshfl [vmem:[#allocation3 + $0x200] sm:$0xf pattern:$0x76325410] %v4109_v29  ;;  %vm2912_vm10 = vcmask 1045504   ;;  %vm1507_vm11 = vcmask 900096  }
 0x1ac   : > { %3378 = vst.sshfl [vmem:[#allocation3 + $0x18] sm:$0xf pattern:$0x76325410] %v4109_v29  ;;  %vm591_vm12 = vcmask 1039360   ;;  %s3508_s29 = sshll.u32 %s3269_s20, 7 }
 0x1ad   : > { %3394 = vst.sshfl [vmem:[#allocation3 + $0x218] sm:$0xf pattern:$0x76325410] %v4260_v6 }
 0x1ae   : > { %3381 = vst.sshfl [vmem:[#allocation3 + $0x30] sm:$0xf pattern:$0x76325410] %v4260_v6 }
 0x1af   : > { %2175 = vrot.lane.b32.xlu1 %v4115_v30, %s3938_s4  ;;  %799 = vrot.lane.b32.xlu0 %v1909_v26, %s3939_s7  ;;  %3388 = vst.sshfl [vmem:[#allocation3 + $0x110] sm:$0xf0 pattern:$0x76325410] %v4260_v6 }
 0x1b0   : > { %3387 = vst.sshfl [vmem:[#allocation3 + $0x108] sm:$0xf0 pattern:$0x76325410] %v453_v10 }
 0x1b3   : > { %1717 = vrot.lane.b32.xlu0 %v4115_v30, %s3937_s3  ;;  %801 = vrot.lane.b32.xlu1 %v4115_v30, %s3939_s7 }
 0x1b7   : > { %1028 = vrot.lane.b32.xlu0 %v1902_v28, %s3940_s8  ;;  %1030 = vrot.lane.b32.xlu1 %v1909_v26, %s3940_s8 }
 0x1bb   : > { %1257 = vrot.lane.b32.xlu0 %v1909_v26, %s3941_s10  ;;  %1259 = vrot.lane.b32.xlu1 %v4115_v30, %s3941_s10 }
 0x1bf   : > { %1486 = vrot.lane.b32.xlu0 %v1902_v28, %s3942_s13  ;;  %1488 = vrot.lane.b32.xlu1 %v1909_v26, %s3942_s13 }
 0x1c3   : > { %571 = vrot.lane.b32.xlu1 %v1909_v26, %s3943_s14  ;;  %569 = vrot.lane.b32.xlu0 %v1902_v28, %s3943_s14 }
 0x1c7   : > { %2169 = vrot.lane.b32.xlu1 %v2116_v32, %s3938_s4  ;;  %2033 = vrot.lane.b32.xlu0 %v2001_v33, %s3936_s0 }
 0x1cb   : > { %1117 = vrot.lane.b32.xlu1 %v2001_v33, %s3940_s8  ;;  %2255 = vrot.lane.b32.xlu0 %v1902_v28, %s3938_s4 }
 0x1cf   : > { %1339 = vrot.lane.b32.xlu1 %v1902_v28, %s3941_s10  ;;  %1253 = vrot.lane.b32.xlu0 %v2116_v32, %s3941_s10 }
 0x1d3   : > { %1711 = vrot.lane.b32.xlu1 %v2116_v32, %s3937_s3  ;;  %1575 = vrot.lane.b32.xlu0 %v2001_v33, %s3942_s13 }
 0x1d7   : > { %1797 = vrot.lane.b32.xlu0 %v1902_v28, %s3937_s3  ;;  %659 = vrot.lane.b32.xlu1 %v2001_v33, %s3943_s14 }
 0x1db   : > { %795 = vrot.lane.b32.xlu0 %v2116_v32, %s3939_s7  ;;  %881 = vrot.lane.b32.xlu1 %v1902_v28, %s3939_s7 }
 0x1df   : > { %2171 = vrot.lane.b32.xlu0 %v2001_v33, %s3938_s4  ;;  %1255 = vrot.lane.b32.xlu1 %v2001_v33, %s3941_s10 }
 0x1e3   : > { %1482 = vrot.lane.b32.xlu0 %v1429_v36, %s3942_s13  ;;  %1484 = vrot.lane.b32.xlu1 %v2116_v32, %s3942_s13 }
 0x1e7   : > { %1713 = vrot.lane.b32.xlu0 %v2001_v33, %s3937_s3  ;;  %1940 = vrot.lane.b32.xlu1 %v1429_v36, %s3936_s0 }
 0x1eb   : > { %1942 = vrot.lane.b32.xlu0 %v2116_v32, %s3936_s0  ;;  %565 = vrot.lane.b32.xlu1 %v1429_v36, %s3943_s14 }
 0x1ef   : > { %567 = vrot.lane.b32.xlu0 %v2116_v32, %s3943_s14  ;;  %797 = vrot.lane.b32.xlu1 %v2001_v33, %s3939_s7 }
 0x1f3   : > { %1024 = vrot.lane.b32.xlu0 %v1429_v36, %s3940_s8  ;;  %1026 = vrot.lane.b32.xlu1 %v2116_v32, %s3940_s8 }
 0x1f7   : > { %1719 = vrot.lane.b32.xlu0 %v1688_v39, %s3937_s3  ;;  %1721 = vrot.lane.b32.xlu1 %v4166_v40, %s3937_s3 }
 0x1fb   : > { %1948 = vrot.lane.b32.xlu0 %v1917_v43, %s3936_s0  ;;  %1950 = vrot.lane.b32.xlu1 %v1688_v39, %s3936_s0 }
 0x1ff   : > { %2177 = vrot.lane.b32.xlu0 %v1688_v39, %s3938_s4  ;;  %2179 = vrot.lane.b32.xlu1 %v4166_v40, %s3938_s4 }
 0x203   : > { %803 = vrot.lane.b32.xlu0 %v1688_v39, %s3939_s7  ;;  %805 = vrot.lane.b32.xlu1 %v4166_v40, %s3939_s7 }
 0x207   : > { %1032 = vrot.lane.b32.xlu0 %v1917_v43, %s3940_s8  ;;  %1034 = vrot.lane.b32.xlu1 %v1688_v39, %s3940_s8 }
 0x20b   : > { %1261 = vrot.lane.b32.xlu0 %v1688_v39, %s3941_s10  ;;  %1263 = vrot.lane.b32.xlu1 %v4166_v40, %s3941_s10 }
 0x20f   : > { %1490 = vrot.lane.b32.xlu0 %v1917_v43, %s3942_s13  ;;  %1492 = vrot.lane.b32.xlu1 %v1688_v39, %s3942_s13 }
 0x213   : > { %573 = vrot.lane.b32.xlu0 %v1917_v43, %s3943_s14  ;;  %575 = vrot.lane.b32.xlu1 %v1688_v39, %s3943_s14 }
 0x217   : > { %2035 = vrot.lane.b32.xlu0 %v4115_v30, %s3936_s0  ;;  %2257 = vrot.lane.b32.xlu1 %v1917_v43, %s3938_s4 }
 0x219   : > { %v4201_v45 = vpop.permute.xlu1 %1946  ;;  %v4203_v46 = vpop.permute.xlu0 %1715 }
 0x21a   : > { %v4213_v50 = vrot.slane %v4201_v45, 4  ;;  %v4253_v2 = vrot.slane %v4203_v46, 4 }
 0x21b   : > { %1119 = vrot.lane.b32.xlu0 %v4115_v30, %s3940_s8  ;;  %1341 = vrot.lane.b32.xlu1 %v1917_v43, %s3941_s10 }
 0x21d   : > { %v4208_v48 = vpop.permute.xlu1 %1944  ;;  %v4210_v49 = vpop.permute.xlu0 %2173 }
 0x21e   : > { %v1958_v51 = vrot.slane %v4208_v48, 4  ;;  %v4230_v57 = vrot.slane %v4210_v49, 4 }
 0x21f   : > { %1577 = vrot.lane.b32.xlu0 %v4115_v30, %s3942_s13  ;;  %1799 = vrot.lane.b32.xlu1 %v1917_v43, %s3937_s3 }
 0x220   : > { %v1969_v53 = vsel %vm589_vm3, %v1958_v51, %v4213_v50 }
 0x221   : > { %v1970_v54 = vsel %vm1965_vm4, %v4208_v48, %v1969_v53  ;;  %v4225_v55 = vpop.permute.xlu1 %2175  ;;  %v4227_v56 = vpop.permute.xlu0 %799 }
 0x222   : > { %1988 = vst [vmem:[#allocation3 + $0xb8] sm:$0xcc] %v1970_v54  ;;  %2093 = vst [vmem:[#allocation3 + $0x2a0] sm:$0xcc] %v1970_v54  ;;  %v2188_v58 = vrot.slane %v4225_v55, 4  ;;  %v4256_v3 = vrot.slane %v4227_v56, 4  ;;  %v401_v54 = vcombine.high %v4168_v42, %v4168_v42 }
 0x223   : > { %661 = vrot.lane.b32.xlu0 %v4115_v30, %s3943_s14  ;;  %883 = vrot.lane.b32.xlu1 %v1917_v43, %s3939_s7 }
 0x224   : > { %v2198_v62 = vsel %vm589_vm3, %v4230_v57, %v2188_v58  ;;  %3393 = vst.sshfl [vmem:[#allocation3 + $0x210] sm:$0xf pattern:$0x76325410] %v401_v54 }
 0x225   : > { %v2199_v63 = vsel %vm2194_vm5, %v4210_v49, %v2198_v62  ;;  %v4248_v0 = vpop.permute.xlu0 %1717  ;;  %v4250_v1 = vpop.permute.xlu1 %801  ;;  %3380 = vst.sshfl [vmem:[#allocation3 + $0x28] sm:$0xf pattern:$0x76325410] %v401_v54 }
 0x226   : > { %2217 = vst [vmem:[#allocation3 + $0xf0] sm:$0x33] %v2199_v63  ;;  %2322 = vst [vmem:[#allocation3 + $0x2d8] sm:$0x33] %v2199_v63  ;;  %v1730_v4 = vrot.slane %v4248_v0, 4  ;;  %v814_v5 = vrot.slane %v4250_v1, 4 }
 0x227   : > { %1723 = vrot.lane.b32.xlu0 %v4237_v59, %s3937_s3  ;;  %1725 = vrot.lane.b32.xlu1 %v4240_v60, %s3937_s3 }
 0x228   : > { %v1740_v8 = vsel %vm589_vm3, %v4253_v2, %v1730_v4  ;;  %v824_v9 = vsel %vm589_vm3, %v4256_v3, %v814_v5 }
 0x229   : > { %v1741_v11 = vsel %vm1736_vm6, %v4203_v46, %v1740_v8  ;;  %v825_v12 = vsel %vm820_vm7, %v4227_v56, %v824_v9  ;;  %v4286_v13 = vpop.permute.xlu0 %1028  ;;  %v4288_v14 = vpop.permute.xlu1 %1030 }
 0x22a   : > { %1759 = vst [vmem:[#allocation3 + $0xb8] sm:$0x33] %v1741_v11  ;;  %1864 = vst [vmem:[#allocation3 + $0x2a0] sm:$0x33] %v1741_v11  ;;  %v1042_v15 = vrot.slane %v4286_v13, 4  ;;  %v4292_v16 = vrot.slane %v4288_v14, 4 }
 0x22b   : > { %843 = vst [vmem:[#allocation3 + $0x48] sm:$0x33] %v825_v12  ;;  %948 = vst [vmem:[#allocation3 + $0x230] sm:$0x33] %v825_v12  ;;  %1952 = vrot.lane.b32.xlu0 %v4267_v7, %s3936_s0  ;;  %1954 = vrot.lane.b32.xlu1 %v4237_v59, %s3936_s0 }
 0x22c   : > { %v1053_v17 = vsel %vm589_vm3, %v1042_v15, %v4292_v16 }
 0x22d   : > { %v1054_v18 = vsel %vm1049_vm8, %v4286_v13, %v1053_v17  ;;  %v4304_v20 = vpop.permute.xlu0 %1257  ;;  %v4306_v21 = vpop.permute.xlu1 %1259 }
 0x22e   : > { %1072 = vst [vmem:[#allocation3 + $0x48] sm:$0xcc] %v1054_v18  ;;  %1177 = vst [vmem:[#allocation3 + $0x230] sm:$0xcc] %v1054_v18  ;;  %v4309_v22 = vrot.slane %v4304_v20, 4  ;;  %v5181_v24 = vrot.slane %v4306_v21, 4 }
 0x22f   : > { %2181 = vrot.lane.b32.xlu0 %v4237_v59, %s3938_s4  ;;  %2183 = vrot.lane.b32.xlu1 %v4240_v60, %s3938_s4 }
 0x230   : > { %v1282_v25 = vsel %vm589_vm3, %v4309_v22, %v5181_v24 }
 0x231   : > { %v1283_v26 = vsel %vm1278_vm9, %v4304_v20, %v1282_v25  ;;  %v4322_v27 = vpop.permute.xlu0 %1486  ;;  %v4324_v28 = vpop.permute.xlu1 %1488  ;;  %v3627_v29 = vld [vmem:[#allocation3 + $0x2a4] ss:$56 sps:$4 sm:$0x3f]   ;;  %v3629_v32 = vld [vmem:[#allocation3 + $0x2a0] ss:$56 sps:$4 sm:$0x3f]  }
 0x232   : > { %1301 = vst [vmem:[#allocation3 + $0x80] sm:$0x33] %v1283_v26  ;;  %1406 = vst [vmem:[#allocation3 + $0x268] sm:$0x33] %v1283_v26  ;;  %v1500_v30 = vrot.slane %v4322_v27, 4  ;;  %v4328_v31 = vrot.slane %v4324_v28, 4  ;;  %3494 = vmatprep.subr.msk.bf16.mxu1 %vm2912_vm10, %v3627_v29 }
 0x233   : > { %807 = vrot.lane.b32.xlu0 %v4237_v59, %s3939_s7  ;;  %809 = vrot.lane.b32.xlu1 %v4240_v60, %s3939_s7  ;;  %v2914_v35 = vsel %vm2912_vm10, %v3629_v32, 0 }
 0x234   : > { %v1511_v33 = vsel %vm589_vm3, %v1500_v30, %v4328_v31  ;;  %2958 = vmatpush1.bf16.msra.mxu1 %v2914_v35 }
 0x235   : > { %v1512_v36 = vsel %vm1507_vm11, %v4322_v27, %v1511_v33  ;;  %v4342_v37 = vpop.permute.xlu1 %571  ;;  %v4344_v38 = vpop.permute.xlu0 %569 }
 0x236   : > { %1530 = vst [vmem:[#allocation3 + $0x80] sm:$0xcc] %v1512_v36  ;;  %1635 = vst [vmem:[#allocation3 + $0x268] sm:$0xcc] %v1512_v36  ;;  %v4347_v39 = vrot.slane %v4342_v37, 4  ;;  %v583_v41 = vrot.slane %v4344_v38, 4 }
 0x237   : > { %1036 = vrot.lane.b32.xlu0 %v4267_v7, %s3940_s8  ;;  %1038 = vrot.lane.b32.xlu1 %v4237_v59, %s3940_s8 }
 0x238   : > { %v595_v43 = vsel %vm589_vm3, %v583_v41, %v4347_v39 }
 0x239   : > { %v596_v44 = vsel %vm591_vm12, %v4344_v38, %v595_v43  ;;  %v4360_v47 = vpop.permute.xlu1 %2169  ;;  %v2034_v52 = vpop.permute.xlu0 %2033 }
 0x23a   : > { %614 = vst [vmem:[#allocation3 + $0x10] sm:$0xcc] %v596_v44  ;;  %719 = vst [vmem:[#allocation3 + $0x1f8] sm:$0xcc] %v596_v44  ;;  %v2043_v53 = vrot.slane %v2034_v52, 4  ;;  %v2185_v11 = vrot.slane %v4360_v47, 4 }
 0x23b   : > { %1265 = vrot.lane.b32.xlu0 %v4237_v59, %s3941_s10  ;;  %1267 = vrot.lane.b32.xlu1 %v4240_v60, %s3941_s10 }
 0x23c   : > { %v2048_v61 = vsel %vm589_vm3, %v2043_v53, %v4213_v50 }
 0x23d   : > { %v2049_v62 = vsel %vm1965_vm4, %v2034_v52, %v2048_v61  ;;  %v1118_v63 = vpop.permute.xlu1 %1117  ;;  %v2256_v8 = vpop.permute.xlu0 %2255  ;;  %v3630_v9 = vld [vmem:[#allocation3 + $0x234] ss:$56 sps:$4 sm:$0xff]   ;;  %v3632_v10 = vld [vmem:[#allocation3 + $0x230] ss:$56 sps:$4 sm:$0xff]  }
 0x23e   : > { %2069 = vst [vmem:[#allocation3 + $0x1c0] sm:$0x33] %v2049_v62  ;;  %v1127_v12 = vrot.slane %v1118_v63, 4  ;;  %v2263_v17 = vrot.slane %v2256_v8, 4  ;;  %2959 = vmatprep.subr.bf16.mxu1 %v3630_v9 }
 0x23f   : > { %1494 = vrot.lane.b32.xlu0 %v4267_v7, %s3942_s13  ;;  %1496 = vrot.lane.b32.xlu1 %v4237_v59, %s3942_s13 }
 0x240   : > { %v1132_v42 = vsel %vm589_vm3, %v1127_v12, %v4292_v16  ;;  %v2267_v18 = vsel %vm589_vm3, %v2185_v11, %v2263_v17  ;;  %v2269_v25 = vsel %vm589_vm3, %v2263_v17, %v4230_v57  ;;  %2960 = vmatpush1.bf16.msra.mxu1 %v3632_v10 }
 0x241   : > { %v1133_v26 = vsel %vm1049_vm8, %v1118_v63, %v1132_v42  ;;  %v2268_v29 = vsel %vm2194_vm5, %v4360_v47, %v2267_v18  ;;  %v2270_v32 = vsel %vm2194_vm5, %v2256_v8, %v2269_v25  ;;  %v1340_v33 = vpop.permute.xlu1 %1339  ;;  %v4387_v35 = vpop.permute.xlu0 %1253  ;;  %v2392_v17 = vld [vmem:[#allocation3 + $0x1f8] sm:$0xff] }
 0x242   : > { %1153 = vst [vmem:[#allocation3 + $0x150] sm:$0x33] %v1133_v26  ;;  %2288 = vst [vmem:[#allocation3 + $0x1c0] sm:$0xcc] %v2268_v29  ;;  %v1347_v36 = vrot.slane %v1340_v33, 4  ;;  %v1269_v43 = vrot.slane %v4387_v35, 4 }
 0x243   : > { %2289 = vst [vmem:[#allocation3 + $0x1c8] sm:$0xcc] %v2270_v32  ;;  %577 = vrot.lane.b32.xlu0 %v4267_v7, %s3943_s14  ;;  %579 = vrot.lane.b32.xlu1 %v4237_v59, %s3943_s14 }
 0x244   : > { %v1353_v44 = vsel %vm589_vm3, %v1347_v36, %v4309_v22  ;;  %v1351_v52 = vsel %vm589_vm3, %v1269_v43, %v1347_v36 }
 0x245   : > { %v1354_v53 = vsel %vm1278_vm9, %v1340_v33, %v1353_v44  ;;  %v1352_v54 = vsel %vm1278_vm9, %v4387_v35, %v1351_v52  ;;  %v4402_v61 = vpop.permute.xlu1 %1711  ;;  %v1576_v62 = vpop.permute.xlu0 %1575  ;;  %v4423_v44 = vld [vmem:[#allocation2 + $0x20] sm:$0x3f] }
 0x246   : > { %1373 = vst [vmem:[#allocation3 + $0x158] sm:$0xcc] %v1354_v53  ;;  %1372 = vst [vmem:[#allocation3 + $0x150] sm:$0xcc] %v1352_v54  ;;  %v1585_v63 = vrot.slane %v1576_v62, 4  ;;  %v1727_v18 = vrot.slane %v4402_v61, 4 }
 0x247   : > { %2037 = vrot.lane.b32.xlu0 %v4166_v40, %s3936_s0  ;;  %2259 = vrot.lane.b32.xlu1 %v4267_v7, %s3938_s4 }
 0x248   : > { %v1590_v59 = vsel %vm589_vm3, %v1585_v63, %v4328_v31 }
 0x249   : > { %v1591_v8 = vsel %vm1507_vm11, %v1576_v62, %v1590_v59  ;;  %v1798_v9 = vpop.permute.xlu0 %1797  ;;  %v660_v10 = vpop.permute.xlu1 %659  ;;  %v2385_v12 = vld [vmem:[#allocation3 + $0x1c0] sm:$0xff] }
 0x24a   : > { %v3633_v42 = vld [vmem:[#allocation3 + $0x1c4] ss:$56 sps:$4 sm:$0xff]   ;;  %1611 = vst [vmem:[#allocation3 + $0x188] sm:$0x33] %v1591_v8  ;;  %v1805_v25 = vrot.slane %v1798_v9, 4  ;;  %v669_v26 = vrot.slane %v660_v10, 4  ;;  %v3452_v29 = vcombine.low %v2385_v12, %v2392_v17 }
 0x24b   : > { %1121 = vrot.lane.b32.xlu0 %v4166_v40, %s3940_s8  ;;  %1343 = vrot.lane.b32.xlu1 %v4267_v7, %s3941_s10  ;;  %v1875_v17 = vld [vmem:[#allocation2 + $0x20] sm:$0x3f] }
 0x24c   : > { %v1809_v32 = vsel %vm589_vm3, %v1727_v18, %v1805_v25  ;;  %v1811_v33 = vsel %vm589_vm3, %v1805_v25, %v4253_v2  ;;  %v674_v36 = vsel %vm589_vm3, %v669_v26, %v4347_v39  ;;  %2961 = vmatprep.subr.bf16.mxu1 %v3633_v42 }
 0x24d   : > { %v1810_v52 = vsel %vm1736_vm6, %v4402_v61, %v1809_v32  ;;  %v1812_v53 = vsel %vm1736_vm6, %v1798_v9, %v1811_v33  ;;  %v675_v54 = vsel %vm591_vm12, %v660_v10, %v674_v36  ;;  %v4429_v62 = vpop.permute.xlu0 %795  ;;  %v882_v63 = vpop.permute.xlu1 %881  ;;  %2962 = vmatpush1.bf16.msra.mxu1 %v3452_v29  ;;  %v1837_v9 = vcombine.high %v4423_v44, %v4423_v44 }
 0x24e   : > { %1830 = vst [vmem:[#allocation3 + $0x188] sm:$0xcc] %v1810_v52  ;;  %1831 = vst [vmem:[#allocation3 + $0x190] sm:$0xcc] %v1812_v53  ;;  %v811_v59 = vrot.slane %v4429_v62, 4  ;;  %v889_v8 = vrot.slane %v882_v63, 4  ;;  %v1844_v36 = vrot.slane %v4423_v44, %v4103_v23  ;;  %v2076_v53 = vcombine.low %v1875_v17, %v1875_v17 }
 0x24f   : > { %695 = vst [vmem:[#allocation3 + $0x118] sm:$0x33] %v675_v54  ;;  %1579 = vrot.lane.b32.xlu0 %v4166_v40, %s3942_s13  ;;  %1801 = vrot.lane.b32.xlu1 %v4267_v7, %s3937_s3  ;;  %v1851_v52 = vrot.slane %v1837_v9, %v4103_v23 }
 0x250   : > { %v893_v10 = vsel %vm589_vm3, %v811_v59, %v889_v8  ;;  %v895_v12 = vsel %vm589_vm3, %v889_v8, %v4256_v3  ;;  %v4463_v8 = vld [vmem:[#allocation2 + $0x20] sm:$0x3f] }
 0x251   : > { %v894_v42 = vsel %vm820_vm7, %v4429_v62, %v893_v10  ;;  %v896_v25 = vsel %vm820_vm7, %v882_v63, %v895_v12  ;;  %v2172_v26 = vpop.permute.xlu0 %2171  ;;  %v1256_v29 = vpop.permute.xlu1 %1255  ;;  %v2302_v27 = vrot.slane %v4463_v8, %v4103_v23 }
 0x252   : > { %914 = vst [vmem:[#allocation3 + $0x118] sm:$0xcc] %v894_v42  ;;  %915 = vst [vmem:[#allocation3 + $0x120] sm:$0xcc] %v896_v25  ;;  %v2186_v32 = vrot.slane %v2172_v26, 4  ;;  %v1270_v33 = vrot.slane %v1256_v29, 4 }
 0x253   : > { %663 = vrot.lane.b32.xlu0 %v4166_v40, %s3943_s14  ;;  %885 = vrot.lane.b32.xlu1 %v4267_v7, %s3939_s7 }
 0x254   : > { %v2193_v54 = vsel %vm589_vm3, %v2185_v11, %v2186_v32  ;;  %v2196_v63 = vsel %vm589_vm3, %v2186_v32, %v4230_v57  ;;  %v1277_v40 = vsel %vm589_vm3, %v1269_v43, %v1270_v33  ;;  %v1280_v7 = vsel %vm589_vm3, %v1270_v33, %v4309_v22 }
 0x255   : > { %v2195_v9 = vsel %vm2194_vm5, %v4360_v47, %v2193_v54  ;;  %v2197_v10 = vsel %vm2194_vm5, %v2172_v26, %v2196_v63  ;;  %v1279_v11 = vsel %vm1278_vm9, %v4387_v35, %v1277_v40  ;;  %v1281_v12 = vsel %vm1278_vm9, %v1256_v29, %v1280_v7  ;;  %v1483_v42 = vpop.permute.xlu0 %1482  ;;  %v1485_v25 = vpop.permute.xlu1 %1484  ;;  %v3637_v32 = vld [vmem:[#allocation3 + $0x154] ss:$56 sps:$4 sm:$0xff]   ;;  %v3639_v24 = vld [vmem:[#allocation3 + $0x150] ss:$56 sps:$4 sm:$0xff]   ;;  %v4481_v63 = vld [vmem:[#allocation2 + $0x20] sm:$0x3f] }
 0x256   : > { %2215 = vst [vmem:[#allocation3 + $0xe0] sm:$0x33] %v2195_v9  ;;  %2216 = vst [vmem:[#allocation3 + $0xe8] sm:$0x33] %v2197_v10  ;;  %v1498_v43 = vrot.slane %v1483_v42, 4  ;;  %v1499_v33 = vrot.slane %v1485_v25, 4  ;;  %v2032_v47 = vrot.slane %v1875_v17, %v4103_v23  ;;  %v2083_v35 = vrot.slane %v2076_v53, %v4103_v23  ;;  %2963 = vmatprep.subr.bf16.mxu1 %v3637_v32 }
 0x257   : > { %1299 = vst [vmem:[#allocation3 + $0x70] sm:$0x33] %v1279_v11  ;;  %1300 = vst [vmem:[#allocation3 + $0x78] sm:$0x33] %v1281_v12  ;;  %1852 = vrot.lane.b32.xlu0 %v1844_v36, %s3937_s3  ;;  %1854 = vrot.lane.b32.xlu1 %v1851_v52, %s3937_s3  ;;  %v2295_v26 = vcombine.high %v4463_v8, %v4463_v8  ;;  %v921_v7 = vcombine.high %v4481_v63, %v4481_v63  ;;  %v959_v11 = vld [vmem:[#allocation2 + $0x20] sm:$0x3f] }
 0x258   : > { %v1506_v29 = vsel %vm589_vm3, %v1498_v43, %v1499_v33  ;;  %v1509_v54 = vsel %vm589_vm3, %v1499_v33, %v1500_v30  ;;  %2964 = vmatpush1.bf16.msra.mxu1 %v3639_v24  ;;  %v1116_v48 = vrot.slane %v959_v11, %v4103_v23 }
 0x259   : > { %v1508_v36 = vsel %vm1507_vm11, %v1483_v42, %v1506_v29  ;;  %v1510_v52 = vsel %vm1507_vm11, %v1485_v25, %v1509_v54  ;;  %v1714_v40 = vpop.permute.xlu0 %1713  ;;  %v1941_v17 = vpop.permute.xlu1 %1940  ;;  %v2309_v30 = vrot.slane %v2295_v26, %v4103_v23  ;;  %v2364_v10 = vld [vmem:[#allocation3 + $0x118] sm:$0xff]  ;;  %v1160_v29 = vcombine.low %v959_v11, %v959_v11 }
 0x25a   : > { %1528 = vst [vmem:[#allocation3 + $0x70] sm:$0xcc] %v1508_v36  ;;  %1529 = vst [vmem:[#allocation3 + $0x78] sm:$0xcc] %v1510_v52  ;;  %v1728_v53 = vrot.slane %v1714_v40, 4 }
 0x25b   : > { %2041 = vrot.lane.b32.xlu0 %v2032_v47, %s3936_s0  ;;  %2084 = vrot.lane.b32.xlu1 %v2083_v35, %s3936_s0  ;;  %v1956_v47 = vrot.slane %v1941_v17, 4  ;;  %v4509_v52 = vld [vmem:[#allocation2 + $0x20] sm:$0x3f] }
 0x25c   : > { %v1735_v9 = vsel %vm589_vm3, %v1727_v18, %v1728_v53  ;;  %v1738_v24 = vsel %vm589_vm3, %v1728_v53, %v4253_v2  ;;  %v928_v18 = vrot.slane %v4481_v63, %v4103_v23 }
 0x25d   : > { %v1737_v12 = vsel %vm1736_vm6, %v4402_v61, %v1735_v9  ;;  %v1739_v42 = vsel %vm1736_vm6, %v1714_v40, %v1738_v24  ;;  %v1943_v25 = vpop.permute.xlu0 %1942  ;;  %v566_v32 = vpop.permute.xlu1 %565  ;;  %v2357_v43 = vld [vmem:[#allocation3 + $0xe0] sm:$0xff]  ;;  %v935_v61 = vrot.slane %v921_v7, %v4103_v23 }
 0x25e   : > { %v3643_v33 = vld [vmem:[#allocation3 + $0xe4] ss:$56 sps:$4 sm:$0xff]   ;;  %1757 = vst [vmem:[#allocation3 + $0xa8] sm:$0x33] %v1737_v12  ;;  %1758 = vst [vmem:[#allocation3 + $0xb0] sm:$0x33] %v1739_v42  ;;  %v3424_v26 = vcombine.low %v2357_v43, %v2364_v10 }
 0x25f   : > { %v1957_v35 = vrot.slane %v1943_v25, 4  ;;  %2310 = vrot.lane.b32.xlu0 %v2302_v27, %s3938_s4  ;;  %2312 = vrot.lane.b32.xlu1 %v2309_v30, %s3938_s4  ;;  %v581_v7 = vrot.slane %v566_v32, 4  ;;  %v1417_v43 = vld [vmem:[#allocation2 + $0x20] sm:$0x3f] }
 0x260   : > { %2965 = vmatprep.subr.bf16.mxu1 %v3643_v33 }
 0x261   : > { %v1964_v54 = vsel %vm589_vm3, %v1956_v47, %v1957_v35  ;;  %v1967_v36 = vsel %vm589_vm3, %v1957_v35, %v1958_v51  ;;  %v568_v27 = vpop.permute.xlu0 %567  ;;  %v798_v30 = vpop.permute.xlu1 %797  ;;  %2966 = vmatpush1.bf16.msra.mxu1 %v3424_v26  ;;  %v1167_v51 = vrot.slane %v1160_v29, %v4103_v23 }
 0x262   : > { %v1966_v40 = vsel %vm1965_vm4, %v1941_v17, %v1964_v54  ;;  %v1968_v53 = vsel %vm1965_vm4, %v1943_v25, %v1967_v36  ;;  %v582_v9 = vrot.slane %v568_v27, 4  ;;  %v812_v24 = vrot.slane %v798_v30, 4  ;;  %v500_v54 = vld [vmem:[#allocation2 + $0x20] sm:$0x3f] }
 0x263   : > { %1986 = vst [vmem:[#allocation3 + $0xa8] sm:$0xcc] %v1966_v40  ;;  %1987 = vst [vmem:[#allocation3 + $0xb0] sm:$0xcc] %v1968_v53  ;;  %936 = vrot.lane.b32.xlu0 %v928_v18, %s3939_s7  ;;  %938 = vrot.lane.b32.xlu1 %v935_v61, %s3939_s7  ;;  %v1379_v17 = vcombine.high %v4509_v52, %v4509_v52 }
 0x264   : > { %v590_v10 = vsel %vm589_vm3, %v581_v7, %v582_v9  ;;  %v593_v12 = vsel %vm589_vm3, %v582_v9, %v583_v41  ;;  %v819_v42 = vsel %vm589_vm3, %v811_v59, %v812_v24  ;;  %v822_v25 = vsel %vm589_vm3, %v812_v24, %v4256_v3 }
 0x265   : > { %v592_v11 = vsel %vm591_vm12, %v566_v32, %v590_v10  ;;  %v594_v33 = vsel %vm591_vm12, %v568_v27, %v593_v12  ;;  %v821_v47 = vsel %vm820_vm7, %v4429_v62, %v819_v42  ;;  %v823_v35 = vsel %vm820_vm7, %v798_v30, %v822_v25  ;;  %v1025_v38 = vpop.permute.xlu0 %1024  ;;  %v1027_v26 = vpop.permute.xlu1 %1026 }
 0x266   : > { %612 = vst [vmem:[#allocation3] sm:$0xcc] %v592_v11  ;;  %613 = vst [vmem:[#allocation3 + $0x8] sm:$0xcc] %v594_v33  ;;  %v1040_v41 = vrot.slane %v1025_v38, 4  ;;  %v1041_v59 = vrot.slane %v1027_v26, 4  ;;  %v1386_v32 = vrot.slane %v4509_v52, %v4103_v23  ;;  %v1393_v18 = vrot.slane %v1379_v17, %v4103_v23 }
 0x267   : > { %841 = vst [vmem:[#allocation3 + $0x38] sm:$0x33] %v821_v47  ;;  %842 = vst [vmem:[#allocation3 + $0x40] sm:$0x33] %v823_v35  ;;  %1125 = vrot.lane.b32.xlu0 %v1116_v48, %s3940_s8  ;;  %1168 = vrot.lane.b32.xlu1 %v1167_v51, %s3940_s8  ;;  %v1618_v62 = vcombine.low %v1417_v43, %v1417_v43  ;;  %v702_v48 = vcombine.low %v500_v54, %v500_v54 }
 0x268   : > { %v1048_v61 = vsel %vm589_vm3, %v1040_v41, %v1041_v59  ;;  %v1051_v29 = vsel %vm589_vm3, %v1041_v59, %v1042_v15  ;;  %v1574_v15 = vrot.slane %v1417_v43, %v4103_v23  ;;  %v472_v10 = vcombine.high %v4260_v6, %v4260_v6 }
 0x269   : > { %v1050_v36 = vsel %vm1049_vm8, %v1025_v38, %v1048_v61  ;;  %v1052_v40 = vsel %vm1049_vm8, %v1027_v26, %v1051_v29  ;;  %v4544_v53 = vpop.permute.xlu0 %1719  ;;  %v4546_v27 = vpop.permute.xlu1 %1721  ;;  %v1625_v24 = vrot.slane %v1618_v62, %v4103_v23  ;;  %v709_v6 = vrot.slane %v702_v48, %v4103_v23 }
 0x26a   : > { %v3649_v30 = vld [vmem:[#allocation3 + $0x74] ss:$56 sps:$4 sm:$0xff]   ;;  %v3651_v7 = vld [vmem:[#allocation3 + $0x70] ss:$56 sps:$4 sm:$0xff]   ;;  %1070 = vst [vmem:[#allocation3 + $0x38] sm:$0xcc] %v1050_v36  ;;  %v658_v47 = vrot.slane %v500_v54, %v4103_v23  ;;  %v1331_v54 = vcombine.low %v4509_v52, %v4509_v52 }
 0x26b   : > { %1071 = vst [vmem:[#allocation3 + $0x40] sm:$0xcc] %v1052_v40  ;;  %v4549_v9 = vrot.slane %v4544_v53, 4  ;;  %v1732_v13 = vrot.slane %v4546_v27, 4  ;;  %1394 = vrot.lane.b32.xlu0 %v1386_v32, %s3941_s10  ;;  %1396 = vrot.lane.b32.xlu1 %v1393_v18, %s3941_s10 }
 0x26c   : > { %2967 = vmatprep.subr.bf16.mxu1 %v3649_v30  ;;  %3395 = vst.sshfl [vmem:[#allocation3 + $0x220] sm:$0xf pattern:$0x76325410] %v472_v10  ;;  %v1338_v48 = vrot.slane %v1331_v54, %v4103_v23  ;;  %v5196_v54 = vrot.slane %v4306_v21, 4 }
 0x26d   : > { %v1742_v51 = vsel %vm589_vm3, %v1730_v4, %v4549_v9  ;;  %v1744_v17 = vsel %vm589_vm3, %v4549_v9, %v1732_v13  ;;  %v1949_v25 = vpop.permute.xlu0 %1948  ;;  %v4570_v43 = vpop.permute.xlu1 %1950  ;;  %2968 = vmatpush1.bf16.msra.mxu1 %v3651_v7  ;;  %v3389_v4 = vld.sshfl [vmem:[#allocation2 + $0x20] sm:$0x33 pattern:$0x76325410] }
 0x26e   : > { %v1743_v12 = vsel %vm1736_vm6, %v4248_v0, %v1742_v51  ;;  %v1745_v42 = vsel %vm1736_vm6, %v4544_v53, %v1744_v17  ;;  %v1960_v11 = vrot.slane %v1949_v25, 4  ;;  %v4573_v33 = vrot.slane %v4570_v43, 4  ;;  %495 = vst [vmem:[#allocation3 + $0x228] sm:$0x33] %v3389_v4 }
 0x26f   : > { %1760 = vst [vmem:[#allocation3 + $0xc0] sm:$0x33] %v1743_v12  ;;  %1865 = vst [vmem:[#allocation3 + $0x2a8] sm:$0x33] %v1743_v12  ;;  %v2247_v0 = vcombine.low %v4463_v8, %v4463_v8  ;;  %1583 = vrot.lane.b32.xlu0 %v1574_v15, %s3942_s13  ;;  %1626 = vrot.lane.b32.xlu1 %v1625_v24, %s3942_s13  ;;  %v873_v4 = vcombine.low %v4481_v63, %v4481_v63 }
 0x270   : > { %1761 = vst [vmem:[#allocation3 + $0xc8] sm:$0x33] %v1745_v42  ;;  %1866 = vst [vmem:[#allocation3 + $0x2b0] sm:$0x33] %v1745_v42  ;;  %v1971_v35 = vsel %vm589_vm3, %v4213_v50, %v1960_v11  ;;  %v1973_v38 = vsel %vm589_vm3, %v1960_v11, %v4573_v33 }
 0x271   : > { %v1972_v26 = vsel %vm1965_vm4, %v4201_v45, %v1971_v35  ;;  %v1974_v41 = vsel %vm1965_vm4, %v1949_v25, %v1973_v38  ;;  %v4588_v8 = vpop.permute.xlu0 %2177  ;;  %v4590_v59 = vpop.permute.xlu1 %2179  ;;  %v3654_v32 = vld [vmem:[#allocation3 + $0x4] ss:$56 sps:$4 sm:$0xff]   ;;  %v3656_v18 = vld [vmem:[#allocation3] ss:$56 sps:$4 sm:$0xff]   ;;  %v2254_v29 = vrot.slane %v2247_v0, %v4103_v23 }
 0x272   : > { %1989 = vst [vmem:[#allocation3 + $0xc0] sm:$0xcc] %v1972_v26  ;;  %2094 = vst [vmem:[#allocation3 + $0x2a8] sm:$0xcc] %v1972_v26  ;;  %v4593_v62 = vrot.slane %v4588_v8, 4  ;;  %v2190_v61 = vrot.slane %v4590_v59, 4  ;;  %2969 = vmatprep.subr.bf16.mxu1 %v3654_v32 }
 0x273   : > { %1990 = vst [vmem:[#allocation3 + $0xc8] sm:$0xcc] %v1974_v41  ;;  %2095 = vst [vmem:[#allocation3 + $0x2b0] sm:$0xcc] %v1974_v41  ;;  %710 = vrot.lane.b32.xlu1 %v709_v6, %s3943_s14  ;;  %667 = vrot.lane.b32.xlu0 %v658_v47, %s3943_s14 }
 0x274   : > { %v2200_v36 = vsel %vm589_vm3, %v2188_v58, %v4593_v62  ;;  %v2202_v40 = vsel %vm589_vm3, %v4593_v62, %v2190_v61  ;;  %2970 = vmatpush1.bf16.msra.mxu1 %v3656_v18 }
 0x275   : > { %v2201_v30 = vsel %vm2194_vm5, %v4225_v55, %v2200_v36  ;;  %v2203_v7 = vsel %vm2194_vm5, %v4588_v8, %v2202_v40  ;;  %v4613_v15 = vpop.permute.xlu0 %803  ;;  %v4615_v52 = vpop.permute.xlu1 %805  ;;  %v1789_v55 = vcombine.low %v4423_v44, %v4423_v44 }
 0x276   : > { %2218 = vst [vmem:[#allocation3 + $0xf8] sm:$0x33] %v2201_v30  ;;  %2323 = vst [vmem:[#allocation3 + $0x2e0] sm:$0x33] %v2201_v30  ;;  %v4618_v58 = vrot.slane %v4613_v15, 4  ;;  %v816_v24 = vrot.slane %v4615_v52, 4 }
 0x277   : > { %2219 = vst [vmem:[#allocation3 + $0x100] sm:$0x33] %v2203_v7  ;;  %2324 = vst [vmem:[#allocation3 + $0x2e8] sm:$0x33] %v2203_v7  ;;  %2261 = vrot.lane.b32.xlu1 %v2254_v29, %s3938_s4  ;;  %2039 = vrot.lane.b32.xlu0 %v4240_v60, %s3936_s0  ;;  %v880_v29 = vrot.slane %v873_v4, %v4103_v23  ;;  %s5116_s0 = scalar_lea.hbm %s5178_s6, %s3508_s29  ;;  %s3831_s4 = scalar_lea.vmem %s5118_s30, 1792 }
 0x278   : > { %v826_v51 = vsel %vm589_vm3, %v814_v5, %v4618_v58  ;;  %v828_v17 = vsel %vm589_vm3, %v4618_v58, %v816_v24  ;;  %3495 = vmatmul.mubr.msk.bf16.vlgmr.msra.gmra.mxu1 %vm349_vm2, %v4099_v19  ;;  %p3832_p7 = scmp.ne.s32.totalorder %s5118_s30, %s3831_s4 }
 0x279   : > { %v827_v44 = vsel %vm820_vm7, %v4250_v1, %v826_v51  ;;  %v829_v10 = vsel %vm820_vm7, %v4613_v15, %v828_v17  ;;  %v1033_v12 = vpop.permute.xlu0 %1032  ;;  %v4641_v42 = vpop.permute.xlu1 %1034  ;;  %3069 = vmatprep.mubr.bf16.mxu1 %v3944_v34  ;;  %v1796_v1 = vrot.slane %v1789_v55, %v4103_v23 }
 0x27a   : > { %844 = vst [vmem:[#allocation3 + $0x50] sm:$0x33] %v827_v44  ;;  %949 = vst [vmem:[#allocation3 + $0x238] sm:$0x33] %v827_v44  ;;  %v1044_v5 = vrot.slane %v1033_v12, 4  ;;  %v4645_v25 = vrot.slane %v4641_v42, 4  ;;  %p3833_p9 = pnand %p3832_p7, %p4033_p3 }
 0x27b   : > { %845 = vst [vmem:[#allocation3 + $0x58] sm:$0x33] %v829_v10  ;;  %950 = vst [vmem:[#allocation3 + $0x240] sm:$0x33] %v829_v10  ;;  %1345 = vrot.lane.b32.xlu1 %v1338_v48, %s3941_s10  ;;  %1123 = vrot.lane.b32.xlu0 %v4240_v60, %s3940_s8 }
 0x27c   : > { %v1055_v11 = vsel %vm589_vm3, %v4292_v16, %v1044_v5  ;;  %v1057_v0 = vsel %vm589_vm3, %v1044_v5, %v4645_v25  ;;  %v2427_v5 = vld [vmem:[%s5177_s5] sm:$0xff]  ;;  %p3834_p11 = pneg %p3833_p9 }
 0x27d   : > { %v1056_v6 = vsel %vm1049_vm8, %v4288_v14, %v1055_v11  ;;  %v1058_v47 = vsel %vm1049_vm8, %v1033_v12, %v1057_v0  ;;  %v4660_v35 = vpop.permute.xlu0 %1261  ;;  %v4662_v63 = vpop.permute.xlu1 %1263  ;;  %v3658_v38 = vld [vmem:[#allocation3 + $0x2ac] ss:$56 sps:$4 sm:$0x3f]   ;;  %v3662_v18 = vld [vmem:[#allocation3 + $0x2a8] ss:$56 sps:$4 sm:$0x3f]  }
 0x27e   : > { %1073 = vst [vmem:[#allocation3 + $0x50] sm:$0xcc] %v1056_v6  ;;  %1178 = vst [vmem:[#allocation3 + $0x238] sm:$0xcc] %v1056_v6  ;;  %v4665_v26 = vrot.slane %v4660_v35, 4  ;;  %v1274_v41 = vrot.slane %v4662_v63, 4  ;;  %3496 = vmatprep.subr.msk.bf16.mxu0 %vm2912_vm10, %v3658_v38 }
 0x27f   : > { %1074 = vst [vmem:[#allocation3 + $0x58] sm:$0xcc] %v1058_v47  ;;  %1179 = vst [vmem:[#allocation3 + $0x240] sm:$0xcc] %v1058_v47  ;;  %1803 = vrot.lane.b32.xlu1 %v1796_v1, %s3937_s3  ;;  %1581 = vrot.lane.b32.xlu0 %v4240_v60, %s3942_s13  ;;  %v2920_v23 = vsel %vm2912_vm10, %v3662_v18, 0  ;;  %s3257_s3 = scalar_lea.sflag [#allocation7], %s239_s9 }
 0x280   : > { %v3660_v32 = vld [vmem:[#allocation3 + $0x2b4] ss:$56 sps:$4 sm:$0x3f]   ;;  %v1284_v36 = vsel %vm589_vm3, %v5196_v54, %v4665_v26  ;;  %v1286_v40 = vsel %vm589_vm3, %v4665_v26, %v1274_v41  ;;  %v3663_v30 = vld [vmem:[#allocation3 + $0x2b0] ss:$56 sps:$4 sm:$0x3f]   ;;  %2999 = vmatpush1.bf16.msra.mxu0 %v2920_v23 }
 0x281   : > { %v1285_v7 = vsel %vm1278_vm9, %v4306_v21, %v1284_v36  ;;  %v1287_v55 = vsel %vm1278_vm9, %v4660_v35, %v1286_v40  ;;  %3498 = vmatprep.subr.msk.bf16.mxu1 %vm2912_vm10, %v3660_v32  ;;  %v1491_v48 = vpop.permute.xlu0 %1490  ;;  %v4687_v51 = vpop.permute.xlu1 %1492  ;;  %v2926_v21 = vsel %vm2912_vm10, %v3663_v30, 0 }
 0x282   : > { %1302 = vst [vmem:[#allocation3 + $0x88] sm:$0x33] %v1285_v7  ;;  %1407 = vst [vmem:[#allocation3 + $0x270] sm:$0x33] %v1285_v7  ;;  %v1502_v17 = vrot.slane %v1491_v48, 4  ;;  %v4690_v44 = vrot.slane %v4687_v51, 4  ;;  %3040 = vmatpush1.bf16.msra.mxu1 %v2926_v21 }
 0x283   : > { %1303 = vst [vmem:[#allocation3 + $0x90] sm:$0x33] %v1287_v55  ;;  %1408 = vst [vmem:[#allocation3 + $0x278] sm:$0x33] %v1287_v55  ;;  %887 = vrot.lane.b32.xlu1 %v880_v29, %s3939_s7  ;;  %665 = vrot.lane.b32.xlu0 %v4240_v60, %s3943_s14  ;;  %s3945_s7 = smov [#allocation8]  }
 0x284   : > { %v1513_v10 = vsel %vm589_vm3, %v4328_v31, %v1502_v17  ;;  %v1515_v12 = vsel %vm589_vm3, %v1502_v17, %v4690_v44  ;;  %s3835_s8 = sshll.u32 %s3945_s7, 4  ;;  %s3836_s8 = int_to_ptr.vmem [resolvable:$false] %s3835_s8 }
 0x285   : > { %v1514_v4 = vsel %vm1507_vm11, %v4324_v28, %v1513_v10  ;;  %v1516_v1 = vsel %vm1507_vm11, %v1491_v48, %v1515_v12  ;;  %v574_v11 = vpop.permute.xlu0 %573  ;;  %v4706_v0 = vpop.permute.xlu1 %575  ;;  %s3837_s10 = scalar_lea.vmem %s3836_s8, 3584  ;;  %p3838_p8 = scmp.lt.s32.totalorder %s5118_s30, %s3836_s8 }
 0x286   : > { %1531 = vst [vmem:[#allocation3 + $0x88] sm:$0xcc] %v1514_v4  ;;  %1636 = vst [vmem:[#allocation3 + $0x270] sm:$0xcc] %v1514_v4  ;;  %v585_v6 = vrot.slane %v574_v11, 4  ;;  %v4709_v47 = vrot.slane %v4706_v0, 4  ;;  %p3839_p10 = scmp.lt.s32.totalorder %s3837_s10, %s3831_s4 }
 0x287   : > { %1532 = vst [vmem:[#allocation3 + $0x90] sm:$0xcc] %v1516_v1  ;;  %1637 = vst [vmem:[#allocation3 + $0x278] sm:$0xcc] %v1516_v1  ;;  %2430 = vperm.xlu0 %3618, %v2427_v5  }
 0x288   : > { %v597_v60 = vsel %vm589_vm3, %v4347_v39, %v585_v6  ;;  %v599_v38 = vsel %vm589_vm3, %v585_v6, %v4709_v47  ;;  %p3840_p12 = por %p3839_p10, %p3838_p8 }
 0x289   : > { %v598_v32 = vsel %vm591_vm12, %v4342_v37, %v597_v60  ;;  %v600_v18 = vsel %vm591_vm12, %v574_v11, %v599_v38  ;;  %v2036_v29 = vpop.permute.xlu0 %2035  ;;  %v2258_v54 = vpop.permute.xlu1 %2257 }
 0x28a   : > { %615 = vst [vmem:[#allocation3 + $0x18] sm:$0xcc] %v598_v32  ;;  %720 = vst [vmem:[#allocation3 + $0x200] sm:$0xcc] %v598_v32  ;;  %v2044_v36 = vrot.slane %v2036_v29, 4  ;;  %v2264_v40 = vrot.slane %v2258_v54, 4  ;;  %p3841_p13 = pnand %p3840_p12, %p3834_p11 }
 0x28b   : > { %616 = vst [vmem:[#allocation3 + $0x20] sm:$0xcc] %v600_v18  ;;  %721 = vst [vmem:[#allocation3 + $0x208] sm:$0xcc] %v600_v18 }
 0x28c   : > { %v2050_v30 = vsel %vm589_vm3, %v4213_v50, %v2044_v36  ;;  %v2052_v7 = vsel %vm589_vm3, %v2044_v36, %v4573_v33  ;;  %v2271_v55 = vsel %vm589_vm3, %v4230_v57, %v2264_v40  ;;  %v2273_v23 = vsel %vm589_vm3, %v2264_v40, %v4593_v62 }
 0x28d   : > { %v2051_v48 = vsel %vm1965_vm4, %v4201_v45, %v2050_v30  ;;  %v2053_v17 = vsel %vm1965_vm4, %v2036_v29, %v2052_v7  ;;  %v2272_v21 = vsel %vm2194_vm5, %v4210_v49, %v2271_v55  ;;  %v2274_v10 = vsel %vm2194_vm5, %v2258_v54, %v2273_v23  ;;  %v1120_v50 = vpop.permute.xlu0 %1119  ;;  %v1342_v12 = vpop.permute.xlu1 %1341  ;;  %v3664_v5 = vld [vmem:[#allocation3 + $0x23c] ss:$56 sps:$4 sm:$0xff]   ;;  %v3669_v45 = vld [vmem:[#allocation3 + $0x238] ss:$56 sps:$4 sm:$0xff]  }
 0x28e   : > { %2070 = vst [vmem:[#allocation3 + $0x1c8] sm:$0x33] %v2051_v48  ;;  %2071 = vst [vmem:[#allocation3 + $0x1d0] sm:$0x33] %v2053_v17  ;;  %v1128_v57 = vrot.slane %v1120_v50, 4  ;;  %v1348_v4 = vrot.slane %v1342_v12, 4  ;;  %3000 = vmatprep.subr.bf16.mxu0 %v3664_v5 }
 0x28f   : > { %2290 = vst [vmem:[#allocation3 + $0x1d0] sm:$0xcc] %v2272_v21  ;;  %2291 = vst [vmem:[#allocation3 + $0x1d8] sm:$0xcc] %v2274_v10  ;;  %v3666_v1 = vld [vmem:[#allocation3 + $0x240] ss:$56 sps:$4 sm:$0xff]   ;;  %3001 = vmatpush1.bf16.msra.mxu0 %v3669_v45 }
 0x290   : > { %v3668_v11 = vld [vmem:[#allocation3 + $0x244] ss:$56 sps:$4 sm:$0xff]   ;;  %v1134_v6 = vsel %vm589_vm3, %v4292_v16, %v1128_v57  ;;  %v1136_v49 = vsel %vm589_vm3, %v1128_v57, %v4645_v25  ;;  %v1355_v60 = vsel %vm589_vm3, %v4309_v22, %v1348_v4  ;;  %v1357_v38 = vsel %vm589_vm3, %v1348_v4, %v4665_v26 }
 0x291   : > { %3041 = vmatprep.subr.bf16.mxu1 %v3668_v11  ;;  %v1135_v32 = vsel %vm1049_vm8, %v4288_v14, %v1134_v6  ;;  %v1137_v18 = vsel %vm1049_vm8, %v1120_v50, %v1136_v49  ;;  %v1356_v29 = vsel %vm1278_vm9, %v4304_v20, %v1355_v60  ;;  %v1358_v16 = vsel %vm1278_vm9, %v1342_v12, %v1357_v38  ;;  %v1578_v54 = vpop.permute.xlu0 %1577  ;;  %v1800_v36 = vpop.permute.xlu1 %1799  ;;  %v2393_v55 = vld [vmem:[#allocation3 + $0x200] sm:$0xff] }
 0x292   : > { %1154 = vst [vmem:[#allocation3 + $0x158] sm:$0x33] %v1135_v32  ;;  %1155 = vst [vmem:[#allocation3 + $0x160] sm:$0x33] %v1137_v18  ;;  %v1586_v22 = vrot.slane %v1578_v54, 4  ;;  %v1806_v40 = vrot.slane %v1800_v36, 4  ;;  %3042 = vmatpush1.bf16.msra.mxu1 %v3666_v1 }
 0x293   : > { %1374 = vst [vmem:[#allocation3 + $0x160] sm:$0xcc] %v1356_v29  ;;  %1375 = vst [vmem:[#allocation3 + $0x168] sm:$0xcc] %v1358_v16 }
 0x294   : > { %v1592_v14 = vsel %vm589_vm3, %v4328_v31, %v1586_v22  ;;  %v1594_v30 = vsel %vm589_vm3, %v1586_v22, %v4690_v44  ;;  %v1813_v20 = vsel %vm589_vm3, %v4253_v2, %v1806_v40  ;;  %v1815_v7 = vsel %vm589_vm3, %v1806_v40, %v4549_v9 }
 0x295   : > { %v1593_v23 = vsel %vm1507_vm11, %v4324_v28, %v1592_v14  ;;  %v1595_v48 = vsel %vm1507_vm11, %v1578_v54, %v1594_v30  ;;  %v1814_v17 = vsel %vm1736_vm6, %v4203_v46, %v1813_v20  ;;  %v1816_v31 = vsel %vm1736_vm6, %v1800_v36, %v1815_v7  ;;  %v662_v21 = vpop.permute.xlu0 %661  ;;  %v884_v10 = vpop.permute.xlu1 %883  ;;  %v2386_v50 = vld [vmem:[#allocation3 + $0x1c8] sm:$0xff] }
 0x296   : > { %v3670_v12 = vld [vmem:[#allocation3 + $0x1cc] ss:$56 sps:$4 sm:$0xff]   ;;  %1612 = vst [vmem:[#allocation3 + $0x190] sm:$0x33] %v1593_v23  ;;  %1613 = vst [vmem:[#allocation3 + $0x198] sm:$0x33] %v1595_v48  ;;  %v3454_v28 = vcombine.low %v2386_v50, %v2393_v55 }
 0x297   : > { %1832 = vst [vmem:[#allocation3 + $0x198] sm:$0xcc] %v1814_v17  ;;  %1833 = vst [vmem:[#allocation3 + $0x1a0] sm:$0xcc] %v1816_v31  ;;  %v670_v2 = vrot.slane %v662_v21, 4  ;;  %v890_v5 = vrot.slane %v884_v10, 4  ;;  %3002 = vmatprep.subr.bf16.mxu0 %v3670_v12 }
 0x298   : > { %v3672_v57 = vld [vmem:[#allocation3 + $0x1d0] ss:$56 sps:$4 sm:$0xff]   ;;  %v3674_v4 = vld [vmem:[#allocation3 + $0x1d4] ss:$56 sps:$4 sm:$0xff]   ;;  %3003 = vmatpush1.bf16.msra.mxu0 %v3454_v28  ;;  %v3691_v28 = vld [vmem:[#allocation3 + $0x84] ss:$56 sps:$4 sm:$0xff]  }
 0x299   : > { %v676_v1 = vsel %vm589_vm3, %v4347_v39, %v670_v2  ;;  %v678_v46 = vsel %vm589_vm3, %v670_v2, %v4709_v47  ;;  %v897_v11 = vsel %vm589_vm3, %v4256_v3, %v890_v5  ;;  %v899_v45 = vsel %vm589_vm3, %v890_v5, %v4618_v58  ;;  %3043 = vmatprep.subr.bf16.mxu1 %v3674_v4  ;;  %v4774_v38 = vpop.permute.xlu0 %1723  ;;  %v4776_v32 = vpop.permute.xlu1 %1725  ;;  %v3687_v4 = vld [vmem:[#allocation3 + $0x7c] ss:$56 sps:$4 sm:$0xff]  }
 0x29a   : > { %v677_v6 = vsel %vm591_vm12, %v4342_v37, %v676_v1  ;;  %v679_v49 = vsel %vm591_vm12, %v662_v21, %v678_v46  ;;  %v898_v60 = vsel %vm820_vm7, %v4227_v56, %v897_v11  ;;  %v900_v39 = vsel %vm820_vm7, %v884_v10, %v899_v45  ;;  %3044 = vmatpush1.bf16.msra.mxu1 %v3672_v57 }
 0x29b   : > { %696 = vst [vmem:[#allocation3 + $0x120] sm:$0x33] %v677_v6  ;;  %697 = vst [vmem:[#allocation3 + $0x128] sm:$0x33] %v679_v49  ;;  %v4779_v3 = vrot.slane %v4774_v38, 4  ;;  %v1734_v37 = vrot.slane %v4776_v32, 4 }
 0x29c   : > { %916 = vst [vmem:[#allocation3 + $0x128] sm:$0xcc] %v898_v60  ;;  %917 = vst [vmem:[#allocation3 + $0x130] sm:$0xcc] %v900_v39  ;;  %v3692_v49 = vld [vmem:[#allocation3 + $0x78] ss:$56 sps:$4 sm:$0xff]  }
 0x29d   : > { %v1746_v56 = vsel %vm589_vm3, %v1732_v13, %v4779_v3  ;;  %v1748_v18 = vsel %vm589_vm3, %v4779_v3, %v1734_v37  ;;  %v1953_v54 = vpop.permute.xlu0 %1952  ;;  %v4794_v36 = vpop.permute.xlu1 %1954  ;;  %v3675_v22 = vld [vmem:[#allocation3 + $0x15c] ss:$56 sps:$4 sm:$0xff]   ;;  %v3680_v20 = vld [vmem:[#allocation3 + $0x158] ss:$56 sps:$4 sm:$0xff]  }
 0x29e   : > { %v1747_v29 = vsel %vm1736_vm6, %v4546_v27, %v1746_v56  ;;  %v1749_v16 = vsel %vm1736_vm6, %v4774_v38, %v1748_v18  ;;  %v1962_v13 = vrot.slane %v1953_v54, 4  ;;  %v4797_v40 = vrot.slane %v4794_v36, 4  ;;  %v3677_v14 = vld [vmem:[#allocation3 + $0x160] ss:$56 sps:$4 sm:$0xff]   ;;  %v3679_v30 = vld [vmem:[#allocation3 + $0x164] ss:$56 sps:$4 sm:$0xff]   ;;  %3004 = vmatprep.subr.bf16.mxu0 %v3675_v22 }
 0x29f   : > { %1762 = vst [vmem:[#allocation3 + $0xd0] sm:$0x33] %v1747_v29  ;;  %1867 = vst [vmem:[#allocation3 + $0x2b8] sm:$0x33] %v1747_v29  ;;  %3045 = vmatprep.subr.bf16.mxu1 %v3679_v30  ;;  %3005 = vmatpush1.bf16.msra.mxu0 %v3680_v20  ;;  %v3693_v56 = vld [vmem:[#allocation3 + $0xc] ss:$56 sps:$4 sm:$0xff]  }
 0x2a0   : > { %1763 = vst [vmem:[#allocation3 + $0xd8] sm:$0x33] %v1749_v16  ;;  %1868 = vst [vmem:[#allocation3 + $0x2c0] sm:$0x33] %v1749_v16  ;;  %v1975_v27 = vsel %vm589_vm3, %v4573_v33, %v1962_v13  ;;  %v1977_v7 = vsel %vm589_vm3, %v1962_v13, %v4797_v40  ;;  %3046 = vmatpush1.bf16.msra.mxu1 %v3677_v14  ;;  %v3697_v18 = vld [vmem:[#allocation3 + $0x14] ss:$56 sps:$4 sm:$0xff]  }
 0x2a1   : > { %v1976_v55 = vsel %vm1965_vm4, %v4570_v43, %v1975_v27  ;;  %v1978_v23 = vsel %vm1965_vm4, %v1953_v54, %v1977_v7  ;;  %v4806_v48 = vpop.permute.xlu0 %2181  ;;  %v4808_v17 = vpop.permute.xlu1 %2183  ;;  %v3695_v14 = vld [vmem:[#allocation3 + $0x10] ss:$56 sps:$4 sm:$0xff]  }
 0x2a2   : > { %v3681_v31 = vld [vmem:[#allocation3 + $0xec] ss:$56 sps:$4 sm:$0xff]   ;;  %1991 = vst [vmem:[#allocation3 + $0xd0] sm:$0xcc] %v1976_v55  ;;  %2096 = vst [vmem:[#allocation3 + $0x2b8] sm:$0xcc] %v1976_v55 }
 0x2a3   : > { %1992 = vst [vmem:[#allocation3 + $0xd8] sm:$0xcc] %v1978_v23  ;;  %2097 = vst [vmem:[#allocation3 + $0x2c0] sm:$0xcc] %v1978_v23  ;;  %v4811_v21 = vrot.slane %v4806_v48, 4  ;;  %v2192_v10 = vrot.slane %v4808_v17, 4  ;;  %3006 = vmatprep.subr.bf16.mxu0 %v3681_v31 }
 0x2a4   : > { %v3683_v50 = vld [vmem:[#allocation3 + $0xf0] ss:$56 sps:$4 sm:$0xff]   ;;  %v3685_v12 = vld [vmem:[#allocation3 + $0xf4] ss:$56 sps:$4 sm:$0xff]  }
 0x2a5   : > { %v3686_v2 = vld [vmem:[#allocation3 + $0xe8] ss:$56 sps:$4 sm:$0xff]   ;;  %v2204_v5 = vsel %vm589_vm3, %v2190_v61, %v4811_v21  ;;  %v2206_v57 = vsel %vm589_vm3, %v4811_v21, %v2192_v10  ;;  %3047 = vmatprep.subr.bf16.mxu1 %v3685_v12  ;;  %v4826_v11 = vpop.permute.xlu0 %807  ;;  %v4828_v45 = vpop.permute.xlu1 %809 }
 0x2a6   : > { %v2205_v1 = vsel %vm2194_vm5, %v4590_v59, %v2204_v5  ;;  %v2207_v46 = vsel %vm2194_vm5, %v4806_v48, %v2206_v57  ;;  %3007 = vmatpush1.bf16.msra.mxu0 %v3686_v2  ;;  %3048 = vmatpush1.bf16.msra.mxu1 %v3683_v50  ;;  %v4831_v61 = vrot.slane %v4826_v11, 4  ;;  %v818_v6 = vrot.slane %v4828_v45, 4  ;;  %v3689_v59 = vld [vmem:[#allocation3 + $0x80] ss:$56 sps:$4 sm:$0xff]  }
 0x2a7   : > { %2220 = vst [vmem:[#allocation3 + $0x108] sm:$0x33] %v2205_v1  ;;  %2325 = vst [vmem:[#allocation3 + $0x2f0] sm:$0x33] %v2205_v1  ;;  %3008 = vmatprep.subr.bf16.mxu0 %v3687_v4  ;;  %3049 = vmatprep.subr.bf16.mxu1 %v3691_v28 }
 0x2a8   : > { %2221 = vst [vmem:[#allocation3 + $0x110] sm:$0x33] %v2207_v46  ;;  %2326 = vst [vmem:[#allocation3 + $0x2f8] sm:$0x33] %v2207_v46  ;;  %v830_v60 = vsel %vm589_vm3, %v816_v24, %v4831_v61  ;;  %v832_v39 = vsel %vm589_vm3, %v4831_v61, %v818_v6 }
 0x2a9   : > { %v831_v29 = vsel %vm820_vm7, %v4615_v52, %v830_v60  ;;  %v833_v16 = vsel %vm820_vm7, %v4826_v11, %v832_v39  ;;  %v1037_v54 = vpop.permute.xlu0 %1036  ;;  %v4846_v22 = vpop.permute.xlu1 %1038  ;;  %v3698_v52 = vld [vmem:[#allocation3 + $0x8] ss:$56 sps:$4 sm:$0xff]  }
 0x2aa   : > { %3009 = vmatpush1.bf16.msra.mxu0 %v3692_v49  ;;  %3050 = vmatpush1.bf16.msra.mxu1 %v3689_v59  ;;  %846 = vst [vmem:[#allocation3 + $0x60] sm:$0x33] %v831_v29  ;;  %951 = vst [vmem:[#allocation3 + $0x248] sm:$0x33] %v831_v29  ;;  %v1046_v24 = vrot.slane %v1037_v54, 4  ;;  %v4849_v13 = vrot.slane %v4846_v22, 4 }
 0x2ab   : > { %847 = vst [vmem:[#allocation3 + $0x68] sm:$0x33] %v833_v16  ;;  %952 = vst [vmem:[#allocation3 + $0x250] sm:$0x33] %v833_v16  ;;  %3010 = vmatprep.subr.bf16.mxu0 %v3693_v56  ;;  %3051 = vmatprep.subr.bf16.mxu1 %v3697_v18 }
 0x2ac   : > { %v1059_v30 = vsel %vm589_vm3, %v4645_v25, %v1046_v24  ;;  %v1061_v20 = vsel %vm589_vm3, %v1046_v24, %v4849_v13 }
 0x2ad   : > { %v1060_v27 = vsel %vm1049_vm8, %v4641_v42, %v1059_v30  ;;  %v1062_v7 = vsel %vm1049_vm8, %v1037_v54, %v1061_v20  ;;  %v4858_v55 = vpop.permute.xlu0 %1265  ;;  %v4860_v23 = vpop.permute.xlu1 %1267 }
 0x2ae   : > { %3011 = vmatpush1.bf16.msra.mxu0 %v3698_v52  ;;  %3052 = vmatpush1.bf16.msra.mxu1 %v3695_v14  ;;  %v3699_v31 = vld [vmem:[#allocation3 + $0x2bc] ss:$56 sps:$4 sm:$0x3f]   ;;  %1075 = vst [vmem:[#allocation3 + $0x60] sm:$0xcc] %v1060_v27  ;;  %v4863_v50 = vrot.slane %v4858_v55, 4 }
 0x2af   : > { %1180 = vst [vmem:[#allocation3 + $0x248] sm:$0xcc] %v1060_v27  ;;  %1076 = vst [vmem:[#allocation3 + $0x68] sm:$0xcc] %v1062_v7  ;;  %v1276_v12 = vrot.slane %v4860_v23, 4  ;;  %3500 = vmatprep.subr.msk.bf16.mxu0 %vm2912_vm10, %v3699_v31 }
 0x2b0   : > { %1181 = vst [vmem:[#allocation3 + $0x250] sm:$0xcc] %v1062_v7  ;;  %v3701_v2 = vld [vmem:[#allocation3 + $0x2c4] ss:$56 sps:$4 sm:$0x3f]   ;;  %v1288_v57 = vsel %vm589_vm3, %v1274_v41, %v4863_v50 }
 0x2b1   : > { %v3703_v5 = vld [vmem:[#allocation3 + $0x2b8] ss:$56 sps:$4 sm:$0x3f]   ;;  %v1290_v4 = vsel %vm589_vm3, %v4863_v50, %v1276_v12  ;;  %3497 = vmatmul.mubr.msk.bf16.vlgmr.msra.gmra.mxu0 %vm349_vm2, %v4099_v19  ;;  %3499 = vmatmul.mubr.msk.bf16.vlgmr.msra.gmra.mxu1 %vm349_vm2, %v4099_v19  ;;  %v1289_v1 = vsel %vm1278_vm9, %v4662_v63, %v1288_v57  ;;  %v1495_v41 = vpop.permute.xlu0 %1494  ;;  %v4884_v59 = vpop.permute.xlu1 %1496 }
 0x2b2   : > { %v3704_v28 = vld [vmem:[#allocation3 + $0x2c0] ss:$56 sps:$4 sm:$0x3f]   ;;  %v1291_v46 = vsel %vm1278_vm9, %v4858_v55, %v1290_v4  ;;  %3502 = vmatprep.subr.msk.bf16.mxu1 %vm2912_vm10, %v3701_v2  ;;  %v2932_v49 = vsel %vm2912_vm10, %v3703_v5, 0  ;;  %3110 = vmatprep.mubr.bf16.mxu0 %v3944_v34  ;;  %1304 = vst [vmem:[#allocation3 + $0x98] sm:$0x33] %v1289_v1 }
 0x2b3   : > { %1409 = vst [vmem:[#allocation3 + $0x280] sm:$0x33] %v1289_v1  ;;  %1305 = vst [vmem:[#allocation3 + $0xa0] sm:$0x33] %v1291_v46  ;;  %v1504_v60 = vrot.slane %v1495_v41, 4  ;;  %v4889_v39 = vrot.slane %v4884_v59, 4  ;;  %3081 = vmatpush1.bf16.msra.mxu0 %v2932_v49  ;;  %3151 = vmatprep.mubr.bf16.mxu1 %v3944_v34 }
 0x2b4   : > { %1410 = vst [vmem:[#allocation3 + $0x288] sm:$0x33] %v1291_v46  ;;  %v2938_v63 = vsel %vm2912_vm10, %v3704_v28, 0 }
 0x2b5   : > { %3122 = vmatpush1.bf16.msra.mxu1 %v2938_v63  ;;  %v1517_v56 = vsel %vm589_vm3, %v4690_v44, %v1504_v60  ;;  %v1519_v18 = vsel %vm589_vm3, %v1504_v60, %v4889_v39  ;;  %v578_v54 = vpop.permute.xlu0 %577  ;;  %v4900_v24 = vpop.permute.xlu1 %579 }
 0x2b6   : > { %v1518_v29 = vsel %vm1507_vm11, %v4687_v51, %v1517_v56  ;;  %v1520_v16 = vsel %vm1507_vm11, %v1495_v41, %v1519_v18  ;;  %v587_v14 = vrot.slane %v578_v54, 4  ;;  %v4903_v52 = vrot.slane %v4900_v24, 4 }
 0x2b7   : > { %1533 = vst [vmem:[#allocation3 + $0x98] sm:$0xcc] %v1518_v29  ;;  %1638 = vst [vmem:[#allocation3 + $0x280] sm:$0xcc] %v1518_v29 }
 0x2b8   : > { %1534 = vst [vmem:[#allocation3 + $0xa0] sm:$0xcc] %v1520_v16  ;;  %1639 = vst [vmem:[#allocation3 + $0x288] sm:$0xcc] %v1520_v16  ;;  %v601_v30 = vsel %vm589_vm3, %v4709_v47, %v587_v14  ;;  %v603_v20 = vsel %vm589_vm3, %v587_v14, %v4903_v52 }
 0x2b9   : > { %v602_v27 = vsel %vm591_vm12, %v4706_v0, %v601_v30  ;;  %v604_v7 = vsel %vm591_vm12, %v578_v54, %v603_v20  ;;  %v2038_v31 = vpop.permute.xlu0 %2037  ;;  %v2260_v2 = vpop.permute.xlu1 %2259 }
 0x2ba   : > { %617 = vst [vmem:[#allocation3 + $0x28] sm:$0xcc] %v602_v27  ;;  %722 = vst [vmem:[#allocation3 + $0x210] sm:$0xcc] %v602_v27  ;;  %v2045_v5 = vrot.slane %v2038_v31, 4  ;;  %v2265_v57 = vrot.slane %v2260_v2, 4 }
 0x2bb   : > { %618 = vst [vmem:[#allocation3 + $0x30] sm:$0xcc] %v604_v7  ;;  %723 = vst [vmem:[#allocation3 + $0x218] sm:$0xcc] %v604_v7 }
 0x2bc   : > { %v2054_v4 = vsel %vm589_vm3, %v4573_v33, %v2045_v5  ;;  %v2056_v28 = vsel %vm589_vm3, %v2045_v5, %v4797_v40  ;;  %v2275_v1 = vsel %vm589_vm3, %v4593_v62, %v2265_v57  ;;  %v2277_v46 = vsel %vm589_vm3, %v2265_v57, %v4811_v21 }
 0x2bd   : > { %v2055_v41 = vsel %vm1965_vm4, %v4570_v43, %v2054_v4  ;;  %v2057_v49 = vsel %vm1965_vm4, %v2038_v31, %v2056_v28  ;;  %v2276_v60 = vsel %vm2194_vm5, %v4588_v8, %v2275_v1  ;;  %v2278_v63 = vsel %vm2194_vm5, %v2260_v2, %v2277_v46  ;;  %v1122_v33 = vpop.permute.xlu0 %1121  ;;  %v1344_v56 = vpop.permute.xlu1 %1343 }
 0x2be   : > { %v3705_v18 = vld [vmem:[#allocation3 + $0x248] ss:$56 sps:$4 sm:$0xff]   ;;  %v3707_v29 = vld [vmem:[#allocation3 + $0x24c] ss:$56 sps:$4 sm:$0xff]   ;;  %2072 = vst [vmem:[#allocation3 + $0x1d8] sm:$0x33] %v2055_v41 }
 0x2bf   : > { %2073 = vst [vmem:[#allocation3 + $0x1e0] sm:$0x33] %v2057_v49  ;;  %2292 = vst [vmem:[#allocation3 + $0x1e0] sm:$0xcc] %v2276_v60  ;;  %v1129_v62 = vrot.slane %v1122_v33, 4  ;;  %v1349_v16 = vrot.slane %v1344_v56, 4  ;;  %3082 = vmatprep.subr.bf16.mxu0 %v3707_v29 }
 0x2c0   : > { %2293 = vst [vmem:[#allocation3 + $0x1e8] sm:$0xcc] %v2278_v63  ;;  %v3708_v54 = vld [vmem:[#allocation3 + $0x250] ss:$56 sps:$4 sm:$0xff]   ;;  %v3710_v43 = vld [vmem:[#allocation3 + $0x254] ss:$56 sps:$4 sm:$0xff]   ;;  %3083 = vmatpush1.bf16.msra.mxu0 %v3705_v18 }
 0x2c1   : > { %v1138_v14 = vsel %vm589_vm3, %v4645_v25, %v1129_v62  ;;  %v1140_v8 = vsel %vm589_vm3, %v1129_v62, %v4849_v13  ;;  %v1359_v30 = vsel %vm589_vm3, %v4665_v26, %v1349_v16  ;;  %v1361_v20 = vsel %vm589_vm3, %v1349_v16, %v4863_v50  ;;  %3123 = vmatprep.subr.bf16.mxu1 %v3710_v43  ;;  %v1580_v2 = vpop.permute.xlu0 %1579  ;;  %v1802_v5 = vpop.permute.xlu1 %1801 }
 0x2c2   : > { %v1139_v27 = vsel %vm1049_vm8, %v4641_v42, %v1138_v14  ;;  %v1141_v7 = vsel %vm1049_vm8, %v1122_v33, %v1140_v8  ;;  %v1360_v31 = vsel %vm1278_vm9, %v4660_v35, %v1359_v30  ;;  %v1362_v25 = vsel %vm1278_vm9, %v1344_v56, %v1361_v20  ;;  %3124 = vmatpush1.bf16.msra.mxu1 %v3708_v54 }
 0x2c3   : > { %1156 = vst [vmem:[#allocation3 + $0x168] sm:$0x33] %v1139_v27  ;;  %1157 = vst [vmem:[#allocation3 + $0x170] sm:$0x33] %v1141_v7  ;;  %v1587_v26 = vrot.slane %v1580_v2, 4  ;;  %v1807_v57 = vrot.slane %v1802_v5, 4 }
 0x2c4   : > { %1376 = vst [vmem:[#allocation3 + $0x170] sm:$0xcc] %v1360_v31  ;;  %1377 = vst [vmem:[#allocation3 + $0x178] sm:$0xcc] %v1362_v25 }
 0x2c5   : > { %v1596_v42 = vsel %vm589_vm3, %v4690_v44, %v1587_v26  ;;  %v1598_v4 = vsel %vm589_vm3, %v1587_v26, %v4889_v39  ;;  %v1817_v35 = vsel %vm589_vm3, %v4549_v9, %v1807_v57  ;;  %v1819_v28 = vsel %vm589_vm3, %v1807_v57, %v4779_v3  ;;  %v664_v44 = vpop.permute.xlu0 %663  ;;  %v886_v60 = vpop.permute.xlu1 %885  ;;  %v3711_v63 = vld [vmem:[#allocation3 + $0x1d8] ss:$56 sps:$4 sm:$0xff]   ;;  %v3713_v33 = vld [vmem:[#allocation3 + $0x1dc] ss:$56 sps:$4 sm:$0xff]  }
 0x2c6   : > { %v1597_v1 = vsel %vm1507_vm11, %v4687_v51, %v1596_v42  ;;  %v1599_v46 = vsel %vm1507_vm11, %v1580_v2, %v1598_v4  ;;  %v1818_v41 = vsel %vm1736_vm6, %v4544_v53, %v1817_v35  ;;  %v1820_v49 = vsel %vm1736_vm6, %v1802_v5, %v1819_v28  ;;  %v3714_v18 = vld [vmem:[#allocation3 + $0x1e0] ss:$56 sps:$4 sm:$0xff]   ;;  %3084 = vmatprep.subr.bf16.mxu0 %v3713_v33  ;;  %v3716_v51 = vld [vmem:[#allocation3 + $0x1e4] ss:$56 sps:$4 sm:$0xff]  }
 0x2c7   : > { %1614 = vst [vmem:[#allocation3 + $0x1a0] sm:$0x33] %v1597_v1  ;;  %1615 = vst [vmem:[#allocation3 + $0x1a8] sm:$0x33] %v1599_v46  ;;  %v671_v9 = vrot.slane %v664_v44, 4  ;;  %v891_v56 = vrot.slane %v886_v60, 4  ;;  %3085 = vmatpush1.bf16.msra.mxu0 %v3711_v63  ;;  %3125 = vmatprep.subr.bf16.mxu1 %v3716_v51 }
 0x2c8   : > { %1834 = vst [vmem:[#allocation3 + $0x1a8] sm:$0xcc] %v1818_v41  ;;  %1835 = vst [vmem:[#allocation3 + $0x1b0] sm:$0xcc] %v1820_v49  ;;  %3126 = vmatpush1.bf16.msra.mxu1 %v3714_v18 }
 0x2c9   : > { %v680_v29 = vsel %vm589_vm3, %v4709_v47, %v671_v9  ;;  %v682_v53 = vsel %vm589_vm3, %v671_v9, %v4903_v52  ;;  %v901_v62 = vsel %vm589_vm3, %v4618_v58, %v891_v56  ;;  %v903_v16 = vsel %vm589_vm3, %v891_v56, %v4831_v61  ;;  %v1853_v8 = vpop.permute.xlu0 %1852  ;;  %v1855_v30 = vpop.permute.xlu1 %1854  ;;  %v3731_v9 = vld [vmem:[#allocation3 + $0x8c] ss:$56 sps:$4 sm:$0xff]  }
 0x2ca   : > { %v681_v54 = vsel %vm591_vm12, %v4706_v0, %v680_v29  ;;  %v683_v43 = vsel %vm591_vm12, %v664_v44, %v682_v53  ;;  %v902_v14 = vsel %vm820_vm7, %v4613_v15, %v901_v62  ;;  %v904_v47 = vsel %vm820_vm7, %v886_v60, %v903_v16  ;;  %v3734_v16 = vld [vmem:[#allocation3 + $0x94] ss:$56 sps:$4 sm:$0xff]  }
 0x2cb   : > { %698 = vst [vmem:[#allocation3 + $0x130] sm:$0x33] %v681_v54  ;;  %699 = vst [vmem:[#allocation3 + $0x138] sm:$0x33] %v683_v43  ;;  %v1856_v58 = vrot.slane %v1853_v8, 4  ;;  %v1857_v20 = vrot.slane %v1855_v30, 4 }
 0x2cc   : > { %918 = vst [vmem:[#allocation3 + $0x138] sm:$0xcc] %v902_v14  ;;  %919 = vst [vmem:[#allocation3 + $0x140] sm:$0xcc] %v904_v47  ;;  %v3729_v14 = vld [vmem:[#allocation3 + $0x88] ss:$56 sps:$4 sm:$0xff]  }
 0x2cd   : > { %v1858_v0 = vsel %vm589_vm3, %v1734_v37, %v1856_v58  ;;  %v1860_v27 = vsel %vm589_vm3, %v1856_v58, %v1857_v20  ;;  %v4975_v31 = vpop.permute.xlu0 %2041  ;;  %v2085_v25 = vpop.permute.xlu1 %2084 }
 0x2ce   : > { %v1859_v15 = vsel %vm1736_vm6, %v4776_v32, %v1858_v0  ;;  %v1861_v7 = vsel %vm1736_vm6, %v1853_v8, %v1860_v27  ;;  %v3717_v2 = vld [vmem:[#allocation3 + $0x168] ss:$56 sps:$4 sm:$0xff]   ;;  %v3719_v5 = vld [vmem:[#allocation3 + $0x16c] ss:$56 sps:$4 sm:$0xff]   ;;  %v2047_v26 = vrot.slane %v4975_v31, 4  ;;  %v2086_v57 = vrot.slane %v2085_v25, 4 }
 0x2cf   : > { %1869 = vst [vmem:[#allocation3 + $0x2c8] sm:$0x33] %v1859_v15  ;;  %1870 = vst [vmem:[#allocation3 + $0x2d0] sm:$0x33] %v1861_v7  ;;  %v3720_v42 = vld [vmem:[#allocation3 + $0x170] ss:$56 sps:$4 sm:$0xff]   ;;  %3086 = vmatprep.subr.bf16.mxu0 %v3719_v5 }
 0x2d0   : > { %v3722_v37 = vld [vmem:[#allocation3 + $0x174] ss:$56 sps:$4 sm:$0xff]   ;;  %v2087_v4 = vsel %vm589_vm3, %v4797_v40, %v2086_v57  ;;  %v2089_v32 = vsel %vm589_vm3, %v2086_v57, %v2047_v26  ;;  %3087 = vmatpush1.bf16.msra.mxu0 %v3717_v2  ;;  %v3732_v8 = vld [vmem:[#allocation3 + $0x90] ss:$56 sps:$4 sm:$0xff]   ;;  %v3740_v27 = vld [vmem:[#allocation3 + $0x24] ss:$56 sps:$4 sm:$0xff]  }
 0x2d1   : > { %v2088_v35 = vsel %vm1965_vm4, %v4794_v36, %v2087_v4  ;;  %v2090_v28 = vsel %vm1965_vm4, %v2085_v25, %v2089_v32  ;;  %3127 = vmatprep.subr.bf16.mxu1 %v3722_v37  ;;  %v2311_v1 = vpop.permute.xlu0 %2310  ;;  %v2313_v46 = vpop.permute.xlu1 %2312  ;;  %v3735_v7 = vld [vmem:[#allocation3 + $0x18] ss:$56 sps:$4 sm:$0xff]  }
 0x2d2   : > { %v3723_v41 = vld [vmem:[#allocation3 + $0xf8] ss:$56 sps:$4 sm:$0xff]   ;;  %v3725_v49 = vld [vmem:[#allocation3 + $0xfc] ss:$56 sps:$4 sm:$0xff]   ;;  %2098 = vst [vmem:[#allocation3 + $0x2c8] sm:$0xcc] %v2088_v35  ;;  %3128 = vmatpush1.bf16.msra.mxu1 %v3720_v42 }
 0x2d3   : > { %2099 = vst [vmem:[#allocation3 + $0x2d0] sm:$0xcc] %v2090_v28  ;;  %v2314_v44 = vrot.slane %v2311_v1, 4  ;;  %v2315_v60 = vrot.slane %v2313_v46, 4  ;;  %v3726_v63 = vld [vmem:[#allocation3 + $0x100] ss:$56 sps:$4 sm:$0xff]   ;;  %3088 = vmatprep.subr.bf16.mxu0 %v3725_v49 }
 0x2d4   : > { %v3728_v33 = vld [vmem:[#allocation3 + $0x104] ss:$56 sps:$4 sm:$0xff]   ;;  %3089 = vmatpush1.bf16.msra.mxu0 %v3723_v41  ;;  %v3738_v2 = vld [vmem:[#allocation3 + $0x20] ss:$56 sps:$4 sm:$0xff]  }
 0x2d5   : > { %v2316_v56 = vsel %vm589_vm3, %v2192_v10, %v2314_v44  ;;  %v2318_v18 = vsel %vm589_vm3, %v2314_v44, %v2315_v60  ;;  %3129 = vmatprep.subr.bf16.mxu1 %v3728_v33  ;;  %v937_v53 = vpop.permute.xlu0 %936  ;;  %v939_v62 = vpop.permute.xlu1 %938  ;;  %3090 = vmatprep.subr.bf16.mxu0 %v3731_v9  ;;  %v3737_v10 = vld [vmem:[#allocation3 + $0x1c] ss:$56 sps:$4 sm:$0xff]  }
 0x2d6   : > { %v2317_v51 = vsel %vm2194_vm5, %v4808_v17, %v2316_v56  ;;  %v2319_v29 = vsel %vm2194_vm5, %v2311_v1, %v2318_v18  ;;  %3130 = vmatpush1.bf16.msra.mxu1 %v3726_v63  ;;  %v940_v54 = vrot.slane %v937_v53, 4  ;;  %v941_v43 = vrot.slane %v939_v62, 4 }
 0x2d7   : > { %2327 = vst [vmem:[#allocation3 + $0x300] sm:$0x33] %v2317_v51  ;;  %2328 = vst [vmem:[#allocation3 + $0x308] sm:$0x33] %v2319_v29  ;;  %3131 = vmatprep.subr.bf16.mxu1 %v3734_v16 }
 0x2d8   : > { %v942_v47 = vsel %vm589_vm3, %v818_v6, %v940_v54  ;;  %v944_v17 = vsel %vm589_vm3, %v940_v54, %v941_v43  ;;  %3091 = vmatpush1.bf16.msra.mxu0 %v3729_v14 }
 0x2d9   : > { %v943_v30 = vsel %vm820_vm7, %v4828_v45, %v942_v47  ;;  %v945_v58 = vsel %vm820_vm7, %v937_v53, %v944_v17  ;;  %v5000_v20 = vpop.permute.xlu0 %1125  ;;  %v1169_v0 = vpop.permute.xlu1 %1168  ;;  %3092 = vmatprep.subr.bf16.mxu0 %v3737_v10 }
 0x2da   : > { %953 = vst [vmem:[#allocation3 + $0x258] sm:$0x33] %v943_v30  ;;  %954 = vst [vmem:[#allocation3 + $0x260] sm:$0x33] %v945_v58  ;;  %3132 = vmatpush1.bf16.msra.mxu1 %v3732_v8  ;;  %v1131_v15 = vrot.slane %v5000_v20, 4  ;;  %v1170_v6 = vrot.slane %v1169_v0, 4 }
 0x2db   : > { %3133 = vmatprep.subr.bf16.mxu1 %v3740_v27 }
 0x2dc   : > { %v1171_v25 = vsel %vm589_vm3, %v4849_v13, %v1170_v6  ;;  %v1173_v45 = vsel %vm589_vm3, %v1170_v6, %v1131_v15  ;;  %3093 = vmatpush1.bf16.msra.mxu0 %v3735_v7 }
 0x2dd   : > { %v1172_v5 = vsel %vm1049_vm8, %v4846_v22, %v1171_v25  ;;  %v1174_v57 = vsel %vm1049_vm8, %v1169_v0, %v1173_v45  ;;  %v1395_v42 = vpop.permute.xlu0 %1394  ;;  %v1397_v37 = vpop.permute.xlu1 %1396 }
 0x2de   : > { %v3741_v4 = vld [vmem:[#allocation3 + $0x2cc] ss:$56 sps:$4 sm:$0x3f]   ;;  %1182 = vst [vmem:[#allocation3 + $0x258] sm:$0xcc] %v1172_v5  ;;  %3134 = vmatpush1.bf16.msra.mxu1 %v3738_v2  ;;  %v1398_v32 = vrot.slane %v1395_v42, 4 }
 0x2df   : > { %1183 = vst [vmem:[#allocation3 + $0x260] sm:$0xcc] %v1174_v57  ;;  %v1399_v35 = vrot.slane %v1397_v37, 4  ;;  %3504 = vmatprep.subr.msk.bf16.mxu0 %vm2912_vm10, %v3741_v4  ;;  %v3743_v28 = vld [vmem:[#allocation3 + $0x2d4] ss:$56 sps:$4 sm:$0x3f]   ;;  %3501 = vmatmul.mubr.msk.bf16.vlgmr.msra.gmra.mxu0 %vm349_vm2, %v4099_v19 }
 0x2e0   : > { %v3745_v1 = vld [vmem:[#allocation3 + $0x2c8] ss:$56 sps:$4 sm:$0x3f]   ;;  %v1400_v46 = vsel %vm589_vm3, %v1276_v12, %v1398_v32  ;;  %3192 = vmatprep.mubr.bf16.mxu0 %v3944_v34  ;;  %3506 = vmatprep.subr.msk.bf16.mxu1 %vm2912_vm10, %v3743_v28 }
 0x2e1   : > { %v1402_v41 = vsel %vm589_vm3, %v1398_v32, %v1399_v35  ;;  %v3746_v49 = vld [vmem:[#allocation3 + $0x2d0] ss:$56 sps:$4 sm:$0x3f]   ;;  %v1401_v44 = vsel %vm1278_vm9, %v4860_v23, %v1400_v46  ;;  %3503 = vmatmul.mubr.msk.bf16.vlgmr.msra.gmra.mxu1 %vm349_vm2, %v4099_v19  ;;  %v2944_v63 = vsel %vm2912_vm10, %v3745_v1, 0  ;;  %v5026_v33 = vpop.permute.xlu0 %1583  ;;  %v1627_v12 = vpop.permute.xlu1 %1626 }
 0x2e2   : > { %v1403_v60 = vsel %vm1278_vm9, %v1395_v42, %v1402_v41  ;;  %1411 = vst [vmem:[#allocation3 + $0x290] sm:$0x33] %v1401_v44  ;;  %3163 = vmatpush1.bf16.msra.mxu0 %v2944_v63  ;;  %v2950_v9 = vsel %vm2912_vm10, %v3746_v49, 0  ;;  %v1589_v56 = vrot.slane %v5026_v33, 4  ;;  %v1628_v23 = vrot.slane %v1627_v12, 4  ;;  %3233 = vmatprep.mubr.bf16.mxu1 %v3944_v34 }
 0x2e3   : > { %1412 = vst [vmem:[#allocation3 + $0x298] sm:$0x33] %v1403_v60  ;;  %3204 = vmatpush1.bf16.msra.mxu1 %v2950_v9 }
 0x2e4   : > { %v1629_v18 = vsel %vm589_vm3, %v4889_v39, %v1628_v23  ;;  %v1631_v51 = vsel %vm589_vm3, %v1628_v23, %v1589_v56 }
 0x2e5   : > { %v1630_v29 = vsel %vm1507_vm11, %v4884_v59, %v1629_v18  ;;  %v1632_v53 = vsel %vm1507_vm11, %v1627_v12, %v1631_v51  ;;  %v711_v62 = vpop.permute.xlu1 %710  ;;  %v5037_v16 = vpop.permute.xlu0 %667 }
 0x2e6   : > { %1640 = vst [vmem:[#allocation3 + $0x290] sm:$0xcc] %v1630_v29  ;;  %1641 = vst [vmem:[#allocation3 + $0x298] sm:$0xcc] %v1632_v53  ;;  %v712_v54 = vrot.slane %v711_v62, 4  ;;  %v673_v43 = vrot.slane %v5037_v16, 4 }
 0x2e8   : > { %v713_v34 = vsel %vm589_vm3, %v4903_v52, %v712_v54  ;;  %v715_v14 = vsel %vm589_vm3, %v712_v54, %v673_v43  ;;  %v3773_v54 = vld [vmem:[#allocation3 + $0x9c] ss:$56 sps:$4 sm:$0xff]  }
 0x2e9   : > { %v714_v10 = vsel %vm591_vm12, %v4900_v24, %v713_v34  ;;  %v716_v47 = vsel %vm591_vm12, %v711_v62, %v715_v14  ;;  %v2262_v17 = vpop.permute.xlu1 %2261  ;;  %v2040_v8 = vpop.permute.xlu0 %2039  ;;  %v3774_v34 = vld [vmem:[#allocation3 + $0xa0] ss:$56 sps:$4 sm:$0xff]   ;;  %v3779_v14 = vld [vmem:[#allocation3 + $0x2c] ss:$56 sps:$4 sm:$0xff]  }
 0x2ea   : > { %724 = vst [vmem:[#allocation3 + $0x220] sm:$0xcc] %v714_v10  ;;  %725 = vst [vmem:[#allocation3 + $0x228] sm:$0xcc] %v716_v47  ;;  %v2266_v30 = vrot.slane %v2262_v17, 4  ;;  %v2046_v58 = vrot.slane %v2040_v8, 4 }
 0x2eb   : > { %v3782_v10 = vld [vmem:[#allocation3 + $0x34] ss:$56 sps:$4 sm:$0xff]   ;;  %v3777_v47 = vld [vmem:[#allocation3 + $0x28] ss:$56 sps:$4 sm:$0xff]  }
 0x2ec   : > { %v2279_v0 = vsel %vm589_vm3, %v4811_v21, %v2266_v30  ;;  %v2058_v27 = vsel %vm589_vm3, %v4797_v40, %v2046_v58  ;;  %v2060_v6 = vsel %vm589_vm3, %v2046_v58, %v2047_v26  ;;  %v3780_v17 = vld [vmem:[#allocation3 + $0x30] ss:$56 sps:$4 sm:$0xff]  }
 0x2ed   : > { %v2280_v7 = vsel %vm2194_vm5, %v4806_v48, %v2279_v0  ;;  %v2059_v25 = vsel %vm1965_vm4, %v4794_v36, %v2058_v27  ;;  %v2061_v45 = vsel %vm1965_vm4, %v2040_v8, %v2060_v6  ;;  %v1346_v2 = vpop.permute.xlu1 %1345  ;;  %v1124_v5 = vpop.permute.xlu0 %1123  ;;  %v3747_v57 = vld [vmem:[#allocation3 + $0x258] ss:$56 sps:$4 sm:$0xff]   ;;  %v3749_v42 = vld [vmem:[#allocation3 + $0x25c] ss:$56 sps:$4 sm:$0xff]  }
 0x2ee   : > { %2294 = vst [vmem:[#allocation3 + $0x1f0] sm:$0xcc] %v2280_v7  ;;  %2074 = vst [vmem:[#allocation3 + $0x1e8] sm:$0x33] %v2059_v25  ;;  %v1350_v40 = vrot.slane %v1346_v2, 4  ;;  %v1130_v21 = vrot.slane %v1124_v5, 4  ;;  %3164 = vmatprep.subr.bf16.mxu0 %v3749_v42 }
 0x2ef   : > { %2075 = vst [vmem:[#allocation3 + $0x1f0] sm:$0x33] %v2061_v45  ;;  %v3750_v31 = vld [vmem:[#allocation3 + $0x260] ss:$56 sps:$4 sm:$0xff]   ;;  %v3752_v26 = vld [vmem:[#allocation3 + $0x264] ss:$56 sps:$4 sm:$0xff]   ;;  %3165 = vmatpush1.bf16.msra.mxu0 %v3747_v57 }
 0x2f0   : > { %v1363_v48 = vsel %vm589_vm3, %v4863_v50, %v1350_v40  ;;  %v1142_v36 = vsel %vm589_vm3, %v4849_v13, %v1130_v21  ;;  %v1144_v37 = vsel %vm589_vm3, %v1130_v21, %v1131_v15  ;;  %3205 = vmatprep.subr.bf16.mxu1 %v3752_v26 }
 0x2f1   : > { %v1364_v4 = vsel %vm1278_vm9, %v4858_v55, %v1363_v48  ;;  %v1143_v32 = vsel %vm1049_vm8, %v4846_v22, %v1142_v36  ;;  %v1145_v35 = vsel %vm1049_vm8, %v1124_v5, %v1144_v37  ;;  %v1804_v28 = vpop.permute.xlu1 %1803  ;;  %v1582_v1 = vpop.permute.xlu0 %1581  ;;  %3206 = vmatpush1.bf16.msra.mxu1 %v3750_v31 }
 0x2f2   : > { %1378 = vst [vmem:[#allocation3 + $0x180] sm:$0xcc] %v1364_v4  ;;  %1158 = vst [vmem:[#allocation3 + $0x178] sm:$0x33] %v1143_v32  ;;  %v1808_v13 = vrot.slane %v1804_v28, 4  ;;  %v1588_v50 = vrot.slane %v1582_v1, 4 }
 0x2f3   : > { %1159 = vst [vmem:[#allocation3 + $0x180] sm:$0x33] %v1145_v35 }
 0x2f4   : > { %v1821_v20 = vsel %vm589_vm3, %v4779_v3, %v1808_v13  ;;  %v1600_v55 = vsel %vm589_vm3, %v4889_v39, %v1588_v50  ;;  %v1602_v15 = vsel %vm589_vm3, %v1588_v50, %v1589_v56 }
 0x2f5   : > { %v1822_v22 = vsel %vm1736_vm6, %v4774_v38, %v1821_v20  ;;  %v1601_v46 = vsel %vm1507_vm11, %v4884_v59, %v1600_v55  ;;  %v1603_v41 = vsel %vm1507_vm11, %v1582_v1, %v1602_v15  ;;  %v888_v49 = vpop.permute.xlu1 %887  ;;  %v3753_v44 = vld [vmem:[#allocation3 + $0x1e8] ss:$56 sps:$4 sm:$0xff]   ;;  %v3755_v60 = vld [vmem:[#allocation3 + $0x1ec] ss:$56 sps:$4 sm:$0xff]   ;;  %v666_v63 = vpop.permute.xlu0 %665 }
 0x2f6   : > { %1836 = vst [vmem:[#allocation3 + $0x1b8] sm:$0xcc] %v1822_v22  ;;  %1616 = vst [vmem:[#allocation3 + $0x1b0] sm:$0x33] %v1601_v46  ;;  %v892_v3 = vrot.slane %v888_v49, 4  ;;  %v672_v12 = vrot.slane %v666_v63, 4  ;;  %3166 = vmatprep.subr.bf16.mxu0 %v3755_v60 }
 0x2f7   : > { %1617 = vst [vmem:[#allocation3 + $0x1b8] sm:$0x33] %v1603_v41  ;;  %v3756_v33 = vld [vmem:[#allocation3 + $0x1f0] ss:$56 sps:$4 sm:$0xff]   ;;  %v3758_v39 = vld [vmem:[#allocation3 + $0x1f4] ss:$56 sps:$4 sm:$0xff]   ;;  %3167 = vmatpush1.bf16.msra.mxu0 %v3753_v44 }
 0x2f8   : > { %v905_v38 = vsel %vm589_vm3, %v4831_v61, %v892_v3  ;;  %3207 = vmatprep.subr.bf16.mxu1 %v3758_v39  ;;  %v684_v9 = vsel %vm589_vm3, %v4903_v52, %v672_v12  ;;  %v686_v56 = vsel %vm589_vm3, %v672_v12, %v673_v43  ;;  %v3771_v43 = vld [vmem:[#allocation3 + $0x98] ss:$56 sps:$4 sm:$0xff]  }
 0x2f9   : > { %v906_v59 = vsel %vm820_vm7, %v4826_v11, %v905_v38  ;;  %3208 = vmatpush1.bf16.msra.mxu1 %v3756_v33  ;;  %v685_v23 = vsel %vm591_vm12, %v4900_v24, %v684_v9  ;;  %v687_v18 = vsel %vm591_vm12, %v666_v63, %v686_v56  ;;  %v3776_v24 = vld [vmem:[#allocation3 + $0xa4] ss:$56 sps:$4 sm:$0xff]  }
 0x2fa   : > { %920 = vst [vmem:[#allocation3 + $0x148] sm:$0xcc] %v906_v59  ;;  %700 = vst [vmem:[#allocation3 + $0x140] sm:$0x33] %v685_v23 }
 0x2fb   : > { %701 = vst [vmem:[#allocation3 + $0x148] sm:$0x33] %v687_v18 }
 0x2fd   : > { %v3759_v61 = vld [vmem:[#allocation3 + $0x178] ss:$56 sps:$4 sm:$0xff]   ;;  %v3761_v51 = vld [vmem:[#allocation3 + $0x17c] ss:$56 sps:$4 sm:$0xff]  }
 0x2fe   : > { %v3762_v29 = vld [vmem:[#allocation3 + $0x180] ss:$56 sps:$4 sm:$0xff]   ;;  %v3764_v11 = vld [vmem:[#allocation3 + $0x184] ss:$56 sps:$4 sm:$0xff]   ;;  %3168 = vmatprep.subr.bf16.mxu0 %v3761_v51 }
 0x2ff   : > { %3209 = vmatprep.subr.bf16.mxu1 %v3764_v11  ;;  %3169 = vmatpush1.bf16.msra.mxu0 %v3759_v61 }
 0x300   : > { %3210 = vmatpush1.bf16.msra.mxu1 %v3762_v29 }
 0x301   : > { %v3765_v52 = vld [vmem:[#allocation3 + $0x108] ss:$56 sps:$4 sm:$0xff]   ;;  %v3767_v53 = vld [vmem:[#allocation3 + $0x10c] ss:$56 sps:$4 sm:$0xff]  }
 0x302   : > { %v3768_v62 = vld [vmem:[#allocation3 + $0x110] ss:$56 sps:$4 sm:$0xff]   ;;  %v3770_v16 = vld [vmem:[#allocation3 + $0x114] ss:$56 sps:$4 sm:$0xff]   ;;  %3170 = vmatprep.subr.bf16.mxu0 %v3767_v53  ;;  %v2431_v8 = vpop.permute.xlu0 %2430 }
 0x303   : > { %3211 = vmatprep.subr.bf16.mxu1 %v3770_v16  ;;  %3171 = vmatpush1.bf16.msra.mxu0 %v3765_v52 }
 0x304   : > { %3212 = vmatpush1.bf16.msra.mxu1 %v3768_v62  ;;  %3172 = vmatprep.subr.bf16.mxu0 %v3773_v54 }
 0x305   : > { %3213 = vmatprep.subr.bf16.mxu1 %v3776_v24 }
 0x307   : > { %3173 = vmatpush1.bf16.msra.mxu0 %v3771_v43 }
 0x308   : > { %3214 = vmatpush1.bf16.msra.mxu1 %v3774_v34  ;;  %3174 = vmatprep.subr.bf16.mxu0 %v3779_v14 }
 0x309   : > { %3215 = vmatprep.subr.bf16.mxu1 %v3782_v10 }
 0x30b   : > { %3175 = vmatpush1.bf16.msra.mxu0 %v3777_v47 }
 0x30c   : > { %3216 = vmatpush1.bf16.msra.mxu1 %v3780_v17 }
 0x30e   : > { %3505 = vmatmul.mubr.msk.bf16.vlgmr.msra.gmra.mxu0 %vm349_vm2, %v4099_v19 }
 0x30f   : > { %3507 = vmatmul.mubr.msk.bf16.vlgmr.msra.gmra.mxu1 %vm349_vm2, %v4099_v19 }
 0x338   : > { %v2989_v30 = vpop.f32.mrf.mxu1 }
 0x339   : > { %v2990_v58 = vadd.f32 %v2989_v30, %v2431_v8 }
 0x33a   : > { %v2991_v0 = vpop.f32.mrf.mxu1 }
 0x33b   : > { %v2992_v27 = vadd.f32 %v2991_v0, %v2431_v8  ;;  %3242 = vst [vmem:[%s4101_s2] sm:$0xff] %v2990_v58 }
 0x33c   : > { %v2993_v6 = vpop.f32.mrf.mxu1 }
 0x33d   : > { %3243 = vst [vmem:[%s4101_s2 + $0x8] sm:$0xff] %v2992_v27 }
 0x33e   : > { %v2994_v7 = vpop.f32.mrf.mxu1 }
 0x371   : > { %v3030_v25 = vpop.f32.mrf.mxu0  ;;  %v3071_v45 = vpop.f32.mrf.mxu1 }
 0x372   : > { %v3031_v2 = vadd.f32 %v3030_v25, %v2431_v8  ;;  %v3072_v5 = vadd.f32 %v3071_v45, %v2431_v8 }
 0x373   : > { %v3032_v57 = vpop.f32.mrf.mxu0  ;;  %v3073_v19 = vpop.f32.mrf.mxu1 }
 0x374   : > { %3244 = vst [vmem:[%s4101_s2 + $0x10] sm:$0xff] %v3031_v2  ;;  %3246 = vst [vmem:[%s4101_s2 + $0x20] sm:$0xff] %v3072_v5  ;;  %v3033_v42 = vadd.f32 %v3032_v57, %v2431_v8  ;;  %v3074_v40 = vadd.f32 %v3073_v19, %v2431_v8 }
 0x375   : > { %v3034_v21 = vpop.f32.mrf.mxu0  ;;  %v3075_v31 = vpop.f32.mrf.mxu1 }
 0x376   : > { %3245 = vst [vmem:[%s4101_s2 + $0x18] sm:$0xff] %v3033_v42  ;;  %3247 = vst [vmem:[%s4101_s2 + $0x28] sm:$0xff] %v3074_v40 }
 0x377   : > { %v3035_v26 = vpop.f32.mrf.mxu0  ;;  %v3076_v48 = vpop.f32.mrf.mxu1 }
 0x39f   : > { %v3112_v36 = vpop.f32.mrf.mxu0 }
 0x3a0   : > { %v3113_v37 = vadd.f32 %v3112_v36, %v2431_v8 }
 0x3a1   : > { %v3153_v4 = vpop.f32.mrf.mxu1  ;;  %v3114_v32 = vpop.f32.mrf.mxu0 }
 0x3a2   : > { %3248 = vst [vmem:[%s4101_s2 + $0x30] sm:$0xff] %v3113_v37  ;;  %v3154_v35 = vadd.f32 %v3153_v4, %v2431_v8  ;;  %v3115_v28 = vadd.f32 %v3114_v32, %v2431_v8 }
 0x3a3   : > { %v3155_v1 = vpop.f32.mrf.mxu1  ;;  %v3116_v13 = vpop.f32.mrf.mxu0 }
 0x3a4   : > { %3250 = vst [vmem:[%s4101_s2 + $0x40] sm:$0xff] %v3154_v35  ;;  %3249 = vst [vmem:[%s4101_s2 + $0x38] sm:$0xff] %v3115_v28  ;;  %v3156_v50 = vadd.f32 %v3155_v1, %v2431_v8 }
 0x3a5   : > { %v3157_v20 = vpop.f32.mrf.mxu1  ;;  %v3117_v55 = vpop.f32.mrf.mxu0 }
 0x3a6   : > { %3251 = vst [vmem:[%s4101_s2 + $0x48] sm:$0xff] %v3156_v50 }
 0x3a7   : > { %v3158_v15 = vpop.f32.mrf.mxu1 }
 0x3ce   : > { %v3194_v22 = vpop.f32.mrf.mxu0 }
 0x3cf   : > { %v3195_v46 = vadd.f32 %v3194_v22, %v2431_v8  ;;  %v3235_v41 = vpop.f32.mrf.mxu1 }
 0x3d0   : > { %v3236_v49 = vadd.f32 %v3235_v41, %v2431_v8  ;;  %v3196_v44 = vpop.f32.mrf.mxu0 }
 0x3d1   : > { %3252 = vst [vmem:[%s4101_s2 + $0x50] sm:$0xff] %v3195_v46  ;;  %v3197_v60 = vadd.f32 %v3196_v44, %v2431_v8  ;;  %v3237_v3 = vpop.f32.mrf.mxu1 }
 0x3d2   : > { %3254 = vst [vmem:[%s4101_s2 + $0x60] sm:$0xff] %v3236_v49  ;;  %v3238_v63 = vadd.f32 %v3237_v3, %v2431_v8  ;;  %v3198_v33 = vpop.f32.mrf.mxu0 }
 0x3d3   : > { %3253 = vst [vmem:[%s4101_s2 + $0x58] sm:$0xff] %v3197_v60  ;;  %v3239_v39 = vpop.f32.mrf.mxu1 }
 0x3d4   : > { %3255 = vst [vmem:[%s4101_s2 + $0x68] sm:$0xff] %v3238_v63  ;;  %v3199_v12 = vpop.f32.mrf.mxu0 }
 0x3d5   : > { %v3240_v38 = vpop.f32.mrf.mxu1 }
 0x3d6   : > { %3844 = shalt.err (!%p3841_p13)
}
 0x3d7   : > { %s3845_s2 = scalar_lea.hbm %s5116_s0, 1792  ;;  %s3849_s14 = scalar_lea.hbm %s5178_s6, 7168 }
 0x3d8   : > { %p3846_p0 = scmp.ne.s32.totalorder %s5116_s0, %s3845_s2  ;;  %p3850_p4 = scmp.lt.s32.totalorder %s5116_s0, %s5178_s6 }
 0x3d9   : > { %p3851_p5 = scmp.lt.s32.totalorder %s3849_s14, %s3845_s2 }
 0x3da   : > { %p3847_p1 = pnand %p3846_p0, %p4033_p3 }
 0x3db   : > { %p3852_p6 = por %p3851_p5, %p3850_p4 }
 0x3dc   : > { %p3848_p2 = pneg %p3847_p1 }
 0x3de   : > { %p3853_p7 = pnand %p3852_p6, %p3848_p2 }
 0x3e0   : > { %3856 = shalt.err (!%p3853_p7)
}
 0x3e1   : > { %3525 = dma.vmem_to_hbm [thread:$0]  (%p4033_p3), %s5118_s30, 1792, %s5116_s0, %s3257_s3  }
 0x3e2 PF: > { %p3537_p9 = scmp.ge.s32.totalorder %s3929_s28, 2  ;;  %s3285_s18 = sand.u32 1, %s3901_s21  }
 0x3e3   : > { %p5197_p11 = scmp.ne.s32.totalorder %s5189_s12, 0  ;;  %s3286_s19 = scalar_lea.sflag [#allocation7], %s3285_s18 }
 0x3e5   : > { %p3532_p8 = pnand %p3537_p9, %p5197_p11 }
 0x3e7   : > { %p3533_p10 = pneg %p3532_p8 }
 0x3e9   : > { %3896 = dma.done.wait (%p3533_p10), %s3286_s19, 1792  }
 0x3ea   : > { %3898 = vsyncadd (%p3533_p10), %s3286_s19, 4294965504  ;;  %s20_s28 = sadd.s32 1, %s3929_s28   ;;  %s5198_s11 = sld [smem:[#allocation16_spill]] }
 0x3eb   : > { %p17_p12 = scmp.ge.s32.totalorder %s20_s28, 6   ;;  %s5199_s20 = sld [smem:[#allocation17_spill]] }
 0x3ec   : > { %s5200_s21 = smov %s3905_s22  ;;  %s5201_s22 = smov %s3909_s23 }
 0x3ed   : > { %s5202_s23 = smov %s4060_s17  ;;  %s5203_s24 = smov %s3921_s26 }
 0x3ee   : > { %s5204_s25 = smov %s3925_s27  ;;  %19 = sbr.rel (!%p17_p12) target bundleno = 11 (0xb), region = 85 }
 0x3f0   : > { %s5205_s26 = smov %s5198_s11 }
 0x3f1   : > { %s5206_s27 = smov %s5199_s20 }
 0x3f3   :  { %3291 = vsyncpa [#allocation6], 1 }
 0x3f4   :  { %3293 = vsyncpa [#allocation6 + $0x1], 1 }
 0x3f5   :  { %3294 = vsyncpa [#allocation7], 1 }
 0x3f6   :  { %3296 = vsyncpa [#allocation7 + $0x1], 1 }
 0x3f7   :  { %3297 = vsyncmov [#allocation4] }
 0x3fa   :  { %s3298_s12 = vpop.sfrf %3297 }
 0x3fb   :  { %p3511_p3 = scmp.ne.s32.totalorder %s3298_s12, 0 }
 0x3fd   :  { %3302 = shalt.err (%p3511_p3)  }

</bundles_post_ra>
